<compile_context>
chip_gen: v7x
topology: tpu7x:2x2x1
jax: 0.10.0
libtpu: 0.0.40
codegen_flags: <defaults>
</compile_context>

<pallas_src>
import functools

import jax
import jax.numpy as jnp
from jax.experimental import pallas as pl
from jax.experimental.pallas import tpu as pltpu

INPUT_SIZE = 6
HIDDEN_SIZE = 20
NUM_LAYERS = 3
NUM_CLASSES = 1


def _lstm_kernel(T, B,
                 x_ref,                       # (T*B, I)
                 wih0, whh0, b0,              # (I, 4H), (H, 4H), (1, 4H)
                 wih1, whh1, b1,              # (H, 4H), (H, 4H), (1, 4H)
                 wih2, whh2, b2,              # (H, 4H), (H, 4H), (1, 4H)
                 fcw, fcb,                    # (1, H), (1, 1)
                 out_ref):                    # (B, 1)
    H = HIDDEN_SIZE
    f32 = jnp.float32

    # Hoisted layer-0 input projection for all timesteps (one bigger matmul,
    # off the serial recurrence chain). Bias b0 folded in here.
    xg_all = (jnp.dot(x_ref[...], wih0[...], preferred_element_type=f32)
              + b0[...])                                        # (T*B, 4H)

    # Load weights once into values (vregs).
    Whh0 = whh0[...]
    Wih1, Whh1, B1 = wih1[...], whh1[...], b1[...]
    Wih2, Whh2, B2 = wih2[...], whh2[...], b2[...]

    def cell(gates, c_prev):
        # column order is [i, f, o, g]: one sigmoid over 3H lanes, one tanh.
        sig = jax.nn.sigmoid(gates[:, :3 * H])
        g_g = jnp.tanh(gates[:, 3 * H:])
        i_g = sig[:, :H]
        f_g = sig[:, H:2 * H]
        o_g = sig[:, 2 * H:]
        c_new = f_g * c_prev + i_g * g_g
        h_new = o_g * jnp.tanh(c_new)
        return h_new, c_new

    zeros = jnp.zeros((B, H), f32)
    h = [zeros, zeros, zeros]
    c = [zeros, zeros, zeros]

    # Fully unrolled over time (T static) and layers.
    for t in range(T):
        # layer 0: precomputed input gates + recurrent matmul
        g0 = (xg_all[t * B:(t + 1) * B, :]
              + jnp.dot(h[0], Whh0, preferred_element_type=f32))
        h[0], c[0] = cell(g0, c[0])

        # layer 1
        g1 = (jnp.dot(h[0], Wih1, preferred_element_type=f32)
              + jnp.dot(h[1], Whh1, preferred_element_type=f32) + B1)
        h[1], c[1] = cell(g1, c[1])

        # layer 2
        g2 = (jnp.dot(h[1], Wih2, preferred_element_type=f32)
              + jnp.dot(h[2], Whh2, preferred_element_type=f32) + B2)
        h[2], c[2] = cell(g2, c[2])

    # fc on the last timestep's top-layer hidden state, done on VPU + XLU
    # (elementwise multiply + lane reduction) to avoid a trailing MXU push.
    out_ref[...] = (jnp.sum(h[2] * fcw[...], axis=-1, keepdims=True)
                    + fcb[...])


def lstm_forward(x, packed_params):
    """x: (B, T, I) float32, batch_first like the PyTorch module. Returns (B, 1)."""
    B, T, I = x.shape
    # (B, T, I) -> (T, B, I) -> (T*B, I): last dim untouched, cheap XLA reshape.
    x2d = jnp.transpose(x, (1, 0, 2)).reshape(T * B, I)

    vmem = pl.BlockSpec(memory_space=pltpu.MemorySpace.VMEM)
    n_inputs = 12

    kernel = functools.partial(_lstm_kernel, T, B)
    return pl.pallas_call(
        kernel,
        out_shape=jax.ShapeDtypeStruct((B, NUM_CLASSES), jnp.float32),
        in_specs=[vmem] * n_inputs,
        out_specs=pl.BlockSpec(memory_space=pltpu.MemorySpace.VMEM),
    )(x2d, *packed_params)


# ---------------------------------------------------------------------------
# Parameter generation (PyTorch layout) + repacking into the kernel layout.
# ---------------------------------------------------------------------------

def init_raw_params(key):
    """PyTorch-layout parameters:
      per layer: weight_ih (4H, in), weight_hh (4H, H), bias_ih (4H,), bias_hh (4H,)
      fc: weight (1, H), bias (1,)
    Gate row order is PyTorch's [i, f, g, o]."""
    H = HIDDEN_SIZE
    bound = 1.0 / jnp.sqrt(jnp.float32(H))
    keys = jax.random.split(key, 4 * NUM_LAYERS + 2)
    kidx = 0
    layers = []
    for l in range(NUM_LAYERS):
        in_dim = INPUT_SIZE if l == 0 else H
        w_ih = jax.random.uniform(keys[kidx], (4 * H, in_dim), jnp.float32, -bound, bound); kidx += 1
        w_hh = jax.random.uniform(keys[kidx], (4 * H, H), jnp.float32, -bound, bound); kidx += 1
        b_ih = jax.random.uniform(keys[kidx], (4 * H,), jnp.float32, -bound, bound); kidx += 1
        b_hh = jax.random.uniform(keys[kidx], (4 * H,), jnp.float32, -bound, bound); kidx += 1
        layers.append((w_ih, w_hh, b_ih, b_hh))
    fc_w = jax.random.uniform(keys[kidx], (NUM_CLASSES, H), jnp.float32, -bound, bound); kidx += 1
    fc_b = jax.random.uniform(keys[kidx], (NUM_CLASSES,), jnp.float32, -bound, bound); kidx += 1
    return layers, (fc_w, fc_b)


def pack_params(raw):
    """Repack PyTorch-layout params into the fused kernel layout.

    Each (4H, in) weight (row order [i,f,g,o]) becomes an (in, 4H) matrix with
    column-block order [i, f, o, g]; b_ih + b_hh fold into one (1, 4H) bias.
    fc.weight stays (1, H), fc.bias becomes (1, 1)."""
    H = HIDDEN_SIZE
    perm = jnp.array([0, 1, 3, 2])  # i, f, g, o  ->  i, f, o, g

    def fuse_w(w):                                   # (4H, in) -> (in, 4H)
        in_dim = w.shape[1]
        w4 = w.reshape(4, H, in_dim)[perm]           # (4, H, in)
        return jnp.transpose(w4, (2, 0, 1)).reshape(in_dim, 4 * H)

    def fuse_b(b_ih, b_hh):                          # -> (1, 4H)
        return (b_ih + b_hh).reshape(4, H)[perm].reshape(1, 4 * H)

    layers, (fc_w, fc_b) = raw
    packed = []
    for (w_ih, w_hh, b_ih, b_hh) in layers:
        packed += [fuse_w(w_ih), fuse_w(w_hh), fuse_b(b_ih, b_hh)]
    packed += [fc_w, fc_b.reshape(1, NUM_CLASSES)]
    return tuple(packed)


def lstm_reference(x, raw):
    """Pure-JAX reference in PyTorch layout / gate order (correctness check)."""
    layers, (fc_w, fc_b) = raw
    H = HIDDEN_SIZE
    B, T, _ = x.shape
    h = [jnp.zeros((B, H), jnp.float32) for _ in range(NUM_LAYERS)]
    c = [jnp.zeros((B, H), jnp.float32) for _ in range(NUM_LAYERS)]
    for t in range(T):
        inp = x[:, t, :]
        for l in range(NUM_LAYERS):
            w_ih, w_hh, b_ih, b_hh = layers[l]
            g = inp @ w_ih.T + h[l] @ w_hh.T + b_ih + b_hh   # (B, 4H), [i,f,g,o]
            i_g = jax.nn.sigmoid(g[:, :H])
            f_g = jax.nn.sigmoid(g[:, H:2 * H])
            g_g = jnp.tanh(g[:, 2 * H:3 * H])
            o_g = jax.nn.sigmoid(g[:, 3 * H:])
            c[l] = f_g * c[l] + i_g * g_g
            h[l] = o_g * jnp.tanh(c[l])
            inp = h[l]
    return inp @ fc_w.T + fc_b


if __name__ == "__main__":
    B, T = 2, 8  # batch=2, seq=8, features=input_size=6
    key = jax.random.PRNGKey(0)
    k_x, k_p = jax.random.split(key)
    x = jax.random.normal(k_x, (B, T, INPUT_SIZE), dtype=jnp.float32)

    raw = init_raw_params(k_p)
    packed = pack_params(raw)

    out = lstm_forward(x, packed)
    out = jax.block_until_ready(out)

    ref = lstm_reference(x, raw)
    assert out.shape == (B, NUM_CLASSES), out.shape
    assert jnp.allclose(out, ref, atol=1e-4, rtol=1e-4), (out, ref)

    print("KERNEL_OK")
</pallas_src>

<mosaic_0001>
module attributes {stable_mosaic.version = 11 : i64} {
  func.func @_lstm_kernel(%arg0: memref<16x6xf32, #tpu.memory_space<vmem>>, %arg1: memref<6x80xf32, #tpu.memory_space<vmem>>, %arg2: memref<20x80xf32, #tpu.memory_space<vmem>>, %arg3: memref<1x80xf32, #tpu.memory_space<vmem>>, %arg4: memref<20x80xf32, #tpu.memory_space<vmem>>, %arg5: memref<20x80xf32, #tpu.memory_space<vmem>>, %arg6: memref<1x80xf32, #tpu.memory_space<vmem>>, %arg7: memref<20x80xf32, #tpu.memory_space<vmem>>, %arg8: memref<20x80xf32, #tpu.memory_space<vmem>>, %arg9: memref<1x80xf32, #tpu.memory_space<vmem>>, %arg10: memref<1x20xf32, #tpu.memory_space<vmem>>, %arg11: memref<1x1xf32, #tpu.memory_space<vmem>>, %arg12: memref<2x1xf32, #tpu.memory_space<vmem>>) attributes {dimension_semantics = [], scalar_prefetch = 0 : i64, scratch_operands = 0 : i64, tpu.core_type = #tpu.core_type<tc>} {
    %c0 = arith.constant 0 : index
    %c0_0 = arith.constant 0 : index
    %0 = vector.load %arg0[%c0, %c0_0] : memref<16x6xf32, #tpu.memory_space<vmem>>, vector<16x6xf32>
    %c0_1 = arith.constant 0 : index
    %c0_2 = arith.constant 0 : index
    %1 = vector.load %arg1[%c0_1, %c0_2] : memref<6x80xf32, #tpu.memory_space<vmem>>, vector<6x80xf32>
    %cst = arith.constant dense<0.000000e+00> : vector<16x80xf32>
    %2 = tpu.matmul %0, %1, %cst {dimension_numbers = #tpu.dot_dimension_numbers<[1], [0], [0], [1], [0, 0, 1, 1], [], []>} : vector<16x6xf32>, vector<6x80xf32>, vector<16x80xf32> -> vector<16x80xf32>
    %c0_3 = arith.constant 0 : index
    %c0_4 = arith.constant 0 : index
    %3 = vector.load %arg3[%c0_3, %c0_4] : memref<1x80xf32, #tpu.memory_space<vmem>>, vector<1x80xf32>
    %4 = vector.broadcast %3 : vector<1x80xf32> to vector<16x80xf32>
    %5 = arith.addf %2, %4 : vector<16x80xf32>
    %c0_5 = arith.constant 0 : index
    %c0_6 = arith.constant 0 : index
    %6 = vector.load %arg2[%c0_5, %c0_6] : memref<20x80xf32, #tpu.memory_space<vmem>>, vector<20x80xf32>
    %c0_7 = arith.constant 0 : index
    %c0_8 = arith.constant 0 : index
    %7 = vector.load %arg4[%c0_7, %c0_8] : memref<20x80xf32, #tpu.memory_space<vmem>>, vector<20x80xf32>
    %c0_9 = arith.constant 0 : index
    %c0_10 = arith.constant 0 : index
    %8 = vector.load %arg5[%c0_9, %c0_10] : memref<20x80xf32, #tpu.memory_space<vmem>>, vector<20x80xf32>
    %c0_11 = arith.constant 0 : index
    %c0_12 = arith.constant 0 : index
    %9 = vector.load %arg6[%c0_11, %c0_12] : memref<1x80xf32, #tpu.memory_space<vmem>>, vector<1x80xf32>
    %c0_13 = arith.constant 0 : index
    %c0_14 = arith.constant 0 : index
    %10 = vector.load %arg7[%c0_13, %c0_14] : memref<20x80xf32, #tpu.memory_space<vmem>>, vector<20x80xf32>
    %c0_15 = arith.constant 0 : index
    %c0_16 = arith.constant 0 : index
    %11 = vector.load %arg8[%c0_15, %c0_16] : memref<20x80xf32, #tpu.memory_space<vmem>>, vector<20x80xf32>
    %c0_17 = arith.constant 0 : index
    %c0_18 = arith.constant 0 : index
    %12 = vector.load %arg9[%c0_17, %c0_18] : memref<1x80xf32, #tpu.memory_space<vmem>>, vector<1x80xf32>
    %cst_19 = arith.constant 0.000000e+00 : f32
    %13 = vector.broadcast %cst_19 : f32 to vector<2x20xf32>
    %14 = vector.extract_strided_slice %5 {offsets = [0, 0], sizes = [2, 80], strides = [1, 1]} : vector<16x80xf32> to vector<2x80xf32>
    %cst_20 = arith.constant dense<0.000000e+00> : vector<2x80xf32>
    %15 = tpu.matmul %13, %6, %cst_20 {dimension_numbers = #tpu.dot_dimension_numbers<[1], [0], [0], [1], [0, 0, 1, 1], [], []>} : vector<2x20xf32>, vector<20x80xf32>, vector<2x80xf32> -> vector<2x80xf32>
    %16 = arith.addf %14, %15 : vector<2x80xf32>
    %17 = vector.extract_strided_slice %16 {offsets = [0, 0], sizes = [2, 60], strides = [1, 1]} : vector<2x80xf32> to vector<2x60xf32>
    %18 = arith.negf %17 : vector<2x60xf32>
    %19 = math.exp %18 : vector<2x60xf32>
    %cst_21 = arith.constant 1.000000e+00 : f32
    %20 = vector.broadcast %cst_21 : f32 to vector<2x60xf32>
    %21 = arith.addf %20, %19 : vector<2x60xf32>
    %22 = arith.divf %20, %21 : vector<2x60xf32>
    %23 = vector.extract_strided_slice %16 {offsets = [0, 60], sizes = [2, 20], strides = [1, 1]} : vector<2x80xf32> to vector<2x20xf32>
    %24 = math.tanh %23 : vector<2x20xf32>
    %25 = vector.extract_strided_slice %22 {offsets = [0, 0], sizes = [2, 20], strides = [1, 1]} : vector<2x60xf32> to vector<2x20xf32>
    %26 = vector.extract_strided_slice %22 {offsets = [0, 20], sizes = [2, 20], strides = [1, 1]} : vector<2x60xf32> to vector<2x20xf32>
    %27 = vector.extract_strided_slice %22 {offsets = [0, 40], sizes = [2, 20], strides = [1, 1]} : vector<2x60xf32> to vector<2x20xf32>
    %28 = arith.mulf %26, %13 : vector<2x20xf32>
    %29 = arith.mulf %25, %24 : vector<2x20xf32>
    %30 = arith.addf %28, %29 : vector<2x20xf32>
    %31 = math.tanh %30 : vector<2x20xf32>
    %32 = arith.mulf %27, %31 : vector<2x20xf32>
    %cst_22 = arith.constant dense<0.000000e+00> : vector<2x80xf32>
    %33 = tpu.matmul %32, %7, %cst_22 {dimension_numbers = #tpu.dot_dimension_numbers<[1], [0], [0], [1], [0, 0, 1, 1], [], []>} : vector<2x20xf32>, vector<20x80xf32>, vector<2x80xf32> -> vector<2x80xf32>
    %cst_23 = arith.constant dense<0.000000e+00> : vector<2x80xf32>
    %34 = tpu.matmul %13, %8, %cst_23 {dimension_numbers = #tpu.dot_dimension_numbers<[1], [0], [0], [1], [0, 0, 1, 1], [], []>} : vector<2x20xf32>, vector<20x80xf32>, vector<2x80xf32> -> vector<2x80xf32>
    %35 = arith.addf %33, %34 : vector<2x80xf32>
    %36 = vector.broadcast %9 : vector<1x80xf32> to vector<2x80xf32>
    %37 = arith.addf %35, %36 : vector<2x80xf32>
    %38 = vector.extract_strided_slice %37 {offsets = [0, 0], sizes = [2, 60], strides = [1, 1]} : vector<2x80xf32> to vector<2x60xf32>
    %39 = arith.negf %38 : vector<2x60xf32>
    %40 = math.exp %39 : vector<2x60xf32>
    %cst_24 = arith.constant 1.000000e+00 : f32
    %41 = vector.broadcast %cst_24 : f32 to vector<2x60xf32>
    %42 = arith.addf %41, %40 : vector<2x60xf32>
    %43 = arith.divf %41, %42 : vector<2x60xf32>
    %44 = vector.extract_strided_slice %37 {offsets = [0, 60], sizes = [2, 20], strides = [1, 1]} : vector<2x80xf32> to vector<2x20xf32>
    %45 = math.tanh %44 : vector<2x20xf32>
    %46 = vector.extract_strided_slice %43 {offsets = [0, 0], sizes = [2, 20], strides = [1, 1]} : vector<2x60xf32> to vector<2x20xf32>
    %47 = vector.extract_strided_slice %43 {offsets = [0, 20], sizes = [2, 20], strides = [1, 1]} : vector<2x60xf32> to vector<2x20xf32>
    %48 = vector.extract_strided_slice %43 {offsets = [0, 40], sizes = [2, 20], strides = [1, 1]} : vector<2x60xf32> to vector<2x20xf32>
    %49 = arith.mulf %47, %13 : vector<2x20xf32>
    %50 = arith.mulf %46, %45 : vector<2x20xf32>
    %51 = arith.addf %49, %50 : vector<2x20xf32>
    %52 = math.tanh %51 : vector<2x20xf32>
    %53 = arith.mulf %48, %52 : vector<2x20xf32>
    %cst_25 = arith.constant dense<0.000000e+00> : vector<2x80xf32>
    %54 = tpu.matmul %53, %10, %cst_25 {dimension_numbers = #tpu.dot_dimension_numbers<[1], [0], [0], [1], [0, 0, 1, 1], [], []>} : vector<2x20xf32>, vector<20x80xf32>, vector<2x80xf32> -> vector<2x80xf32>
    %cst_26 = arith.constant dense<0.000000e+00> : vector<2x80xf32>
    %55 = tpu.matmul %13, %11, %cst_26 {dimension_numbers = #tpu.dot_dimension_numbers<[1], [0], [0], [1], [0, 0, 1, 1], [], []>} : vector<2x20xf32>, vector<20x80xf32>, vector<2x80xf32> -> vector<2x80xf32>
    %56 = arith.addf %54, %55 : vector<2x80xf32>
    %57 = vector.broadcast %12 : vector<1x80xf32> to vector<2x80xf32>
    %58 = arith.addf %56, %57 : vector<2x80xf32>
    %59 = vector.extract_strided_slice %58 {offsets = [0, 0], sizes = [2, 60], strides = [1, 1]} : vector<2x80xf32> to vector<2x60xf32>
    %60 = arith.negf %59 : vector<2x60xf32>
    %61 = math.exp %60 : vector<2x60xf32>
    %cst_27 = arith.constant 1.000000e+00 : f32
    %62 = vector.broadcast %cst_27 : f32 to vector<2x60xf32>
    %63 = arith.addf %62, %61 : vector<2x60xf32>
    %64 = arith.divf %62, %63 : vector<2x60xf32>
    %65 = vector.extract_strided_slice %58 {offsets = [0, 60], sizes = [2, 20], strides = [1, 1]} : vector<2x80xf32> to vector<2x20xf32>
    %66 = math.tanh %65 : vector<2x20xf32>
    %67 = vector.extract_strided_slice %64 {offsets = [0, 0], sizes = [2, 20], strides = [1, 1]} : vector<2x60xf32> to vector<2x20xf32>
    %68 = vector.extract_strided_slice %64 {offsets = [0, 20], sizes = [2, 20], strides = [1, 1]} : vector<2x60xf32> to vector<2x20xf32>
    %69 = vector.extract_strided_slice %64 {offsets = [0, 40], sizes = [2, 20], strides = [1, 1]} : vector<2x60xf32> to vector<2x20xf32>
    %70 = arith.mulf %68, %13 : vector<2x20xf32>
    %71 = arith.mulf %67, %66 : vector<2x20xf32>
    %72 = arith.addf %70, %71 : vector<2x20xf32>
    %73 = math.tanh %72 : vector<2x20xf32>
    %74 = arith.mulf %69, %73 : vector<2x20xf32>
    %75 = vector.extract_strided_slice %5 {offsets = [2, 0], sizes = [2, 80], strides = [1, 1]} : vector<16x80xf32> to vector<2x80xf32>
    %cst_28 = arith.constant dense<0.000000e+00> : vector<2x80xf32>
    %76 = tpu.matmul %32, %6, %cst_28 {dimension_numbers = #tpu.dot_dimension_numbers<[1], [0], [0], [1], [0, 0, 1, 1], [], []>} : vector<2x20xf32>, vector<20x80xf32>, vector<2x80xf32> -> vector<2x80xf32>
    %77 = arith.addf %75, %76 : vector<2x80xf32>
    %78 = vector.extract_strided_slice %77 {offsets = [0, 0], sizes = [2, 60], strides = [1, 1]} : vector<2x80xf32> to vector<2x60xf32>
    %79 = arith.negf %78 : vector<2x60xf32>
    %80 = math.exp %79 : vector<2x60xf32>
    %cst_29 = arith.constant 1.000000e+00 : f32
    %81 = vector.broadcast %cst_29 : f32 to vector<2x60xf32>
    %82 = arith.addf %81, %80 : vector<2x60xf32>
    %83 = arith.divf %81, %82 : vector<2x60xf32>
    %84 = vector.extract_strided_slice %77 {offsets = [0, 60], sizes = [2, 20], strides = [1, 1]} : vector<2x80xf32> to vector<2x20xf32>
    %85 = math.tanh %84 : vector<2x20xf32>
    %86 = vector.extract_strided_slice %83 {offsets = [0, 0], sizes = [2, 20], strides = [1, 1]} : vector<2x60xf32> to vector<2x20xf32>
    %87 = vector.extract_strided_slice %83 {offsets = [0, 20], sizes = [2, 20], strides = [1, 1]} : vector<2x60xf32> to vector<2x20xf32>
    %88 = vector.extract_strided_slice %83 {offsets = [0, 40], sizes = [2, 20], strides = [1, 1]} : vector<2x60xf32> to vector<2x20xf32>
    %89 = arith.mulf %87, %30 : vector<2x20xf32>
    %90 = arith.mulf %86, %85 : vector<2x20xf32>
    %91 = arith.addf %89, %90 : vector<2x20xf32>
    %92 = math.tanh %91 : vector<2x20xf32>
    %93 = arith.mulf %88, %92 : vector<2x20xf32>
    %cst_30 = arith.constant dense<0.000000e+00> : vector<2x80xf32>
    %94 = tpu.matmul %93, %7, %cst_30 {dimension_numbers = #tpu.dot_dimension_numbers<[1], [0], [0], [1], [0, 0, 1, 1], [], []>} : vector<2x20xf32>, vector<20x80xf32>, vector<2x80xf32> -> vector<2x80xf32>
    %cst_31 = arith.constant dense<0.000000e+00> : vector<2x80xf32>
    %95 = tpu.matmul %53, %8, %cst_31 {dimension_numbers = #tpu.dot_dimension_numbers<[1], [0], [0], [1], [0, 0, 1, 1], [], []>} : vector<2x20xf32>, vector<20x80xf32>, vector<2x80xf32> -> vector<2x80xf32>
    %96 = arith.addf %94, %95 : vector<2x80xf32>
    %97 = vector.broadcast %9 : vector<1x80xf32> to vector<2x80xf32>
    %98 = arith.addf %96, %97 : vector<2x80xf32>
    %99 = vector.extract_strided_slice %98 {offsets = [0, 0], sizes = [2, 60], strides = [1, 1]} : vector<2x80xf32> to vector<2x60xf32>
    %100 = arith.negf %99 : vector<2x60xf32>
    %101 = math.exp %100 : vector<2x60xf32>
    %cst_32 = arith.constant 1.000000e+00 : f32
    %102 = vector.broadcast %cst_32 : f32 to vector<2x60xf32>
    %103 = arith.addf %102, %101 : vector<2x60xf32>
    %104 = arith.divf %102, %103 : vector<2x60xf32>
    %105 = vector.extract_strided_slice %98 {offsets = [0, 60], sizes = [2, 20], strides = [1, 1]} : vector<2x80xf32> to vector<2x20xf32>
    %106 = math.tanh %105 : vector<2x20xf32>
    %107 = vector.extract_strided_slice %104 {offsets = [0, 0], sizes = [2, 20], strides = [1, 1]} : vector<2x60xf32> to vector<2x20xf32>
    %108 = vector.extract_strided_slice %104 {offsets = [0, 20], sizes = [2, 20], strides = [1, 1]} : vector<2x60xf32> to vector<2x20xf32>
    %109 = vector.extract_strided_slice %104 {offsets = [0, 40], sizes = [2, 20], strides = [1, 1]} : vector<2x60xf32> to vector<2x20xf32>
    %110 = arith.mulf %108, %51 : vector<2x20xf32>
    %111 = arith.mulf %107, %106 : vector<2x20xf32>
    %112 = arith.addf %110, %111 : vector<2x20xf32>
    %113 = math.tanh %112 : vector<2x20xf32>
    %114 = arith.mulf %109, %113 : vector<2x20xf32>
    %cst_33 = arith.constant dense<0.000000e+00> : vector<2x80xf32>
    %115 = tpu.matmul %114, %10, %cst_33 {dimension_numbers = #tpu.dot_dimension_numbers<[1], [0], [0], [1], [0, 0, 1, 1], [], []>} : vector<2x20xf32>, vector<20x80xf32>, vector<2x80xf32> -> vector<2x80xf32>
    %cst_34 = arith.constant dense<0.000000e+00> : vector<2x80xf32>
    %116 = tpu.matmul %74, %11, %cst_34 {dimension_numbers = #tpu.dot_dimension_numbers<[1], [0], [0], [1], [0, 0, 1, 1], [], []>} : vector<2x20xf32>, vector<20x80xf32>, vector<2x80xf32> -> vector<2x80xf32>
    %117 = arith.addf %115, %116 : vector<2x80xf32>
    %118 = vector.broadcast %12 : vector<1x80xf32> to vector<2x80xf32>
    %119 = arith.addf %117, %118 : vector<2x80xf32>
    %120 = vector.extract_strided_slice %119 {offsets = [0, 0], sizes = [2, 60], strides = [1, 1]} : vector<2x80xf32> to vector<2x60xf32>
    %121 = arith.negf %120 : vector<2x60xf32>
    %122 = math.exp %121 : vector<2x60xf32>
    %cst_35 = arith.constant 1.000000e+00 : f32
    %123 = vector.broadcast %cst_35 : f32 to vector<2x60xf32>
    %124 = arith.addf %123, %122 : vector<2x60xf32>
    %125 = arith.divf %123, %124 : vector<2x60xf32>
    %126 = vector.extract_strided_slice %119 {offsets = [0, 60], sizes = [2, 20], strides = [1, 1]} : vector<2x80xf32> to vector<2x20xf32>
    %127 = math.tanh %126 : vector<2x20xf32>
    %128 = vector.extract_strided_slice %125 {offsets = [0, 0], sizes = [2, 20], strides = [1, 1]} : vector<2x60xf32> to vector<2x20xf32>
    %129 = vector.extract_strided_slice %125 {offsets = [0, 20], sizes = [2, 20], strides = [1, 1]} : vector<2x60xf32> to vector<2x20xf32>
    %130 = vector.extract_strided_slice %125 {offsets = [0, 40], sizes = [2, 20], strides = [1, 1]} : vector<2x60xf32> to vector<2x20xf32>
    %131 = arith.mulf %129, %72 : vector<2x20xf32>
    %132 = arith.mulf %128, %127 : vector<2x20xf32>
    %133 = arith.addf %131, %132 : vector<2x20xf32>
    %134 = math.tanh %133 : vector<2x20xf32>
    %135 = arith.mulf %130, %134 : vector<2x20xf32>
    %136 = vector.extract_strided_slice %5 {offsets = [4, 0], sizes = [2, 80], strides = [1, 1]} : vector<16x80xf32> to vector<2x80xf32>
    %cst_36 = arith.constant dense<0.000000e+00> : vector<2x80xf32>
    %137 = tpu.matmul %93, %6, %cst_36 {dimension_numbers = #tpu.dot_dimension_numbers<[1], [0], [0], [1], [0, 0, 1, 1], [], []>} : vector<2x20xf32>, vector<20x80xf32>, vector<2x80xf32> -> vector<2x80xf32>
    %138 = arith.addf %136, %137 : vector<2x80xf32>
    %139 = vector.extract_strided_slice %138 {offsets = [0, 0], sizes = [2, 60], strides = [1, 1]} : vector<2x80xf32> to vector<2x60xf32>
    %140 = arith.negf %139 : vector<2x60xf32>
    %141 = math.exp %140 : vector<2x60xf32>
    %cst_37 = arith.constant 1.000000e+00 : f32
    %142 = vector.broadcast %cst_37 : f32 to vector<2x60xf32>
    %143 = arith.addf %142, %141 : vector<2x60xf32>
    %144 = arith.divf %142, %143 : vector<2x60xf32>
    %145 = vector.extract_strided_slice %138 {offsets = [0, 60], sizes = [2, 20], strides = [1, 1]} : vector<2x80xf32> to vector<2x20xf32>
    %146 = math.tanh %145 : vector<2x20xf32>
    %147 = vector.extract_strided_slice %144 {offsets = [0, 0], sizes = [2, 20], strides = [1, 1]} : vector<2x60xf32> to vector<2x20xf32>
    %148 = vector.extract_strided_slice %144 {offsets = [0, 20], sizes = [2, 20], strides = [1, 1]} : vector<2x60xf32> to vector<2x20xf32>
    %149 = vector.extract_strided_slice %144 {offsets = [0, 40], sizes = [2, 20], strides = [1, 1]} : vector<2x60xf32> to vector<2x20xf32>
    %150 = arith.mulf %148, %91 : vector<2x20xf32>
    %151 = arith.mulf %147, %146 : vector<2x20xf32>
    %152 = arith.addf %150, %151 : vector<2x20xf32>
    %153 = math.tanh %152 : vector<2x20xf32>
    %154 = arith.mulf %149, %153 : vector<2x20xf32>
    %cst_38 = arith.constant dense<0.000000e+00> : vector<2x80xf32>
    %155 = tpu.matmul %154, %7, %cst_38 {dimension_numbers = #tpu.dot_dimension_numbers<[1], [0], [0], [1], [0, 0, 1, 1], [], []>} : vector<2x20xf32>, vector<20x80xf32>, vector<2x80xf32> -> vector<2x80xf32>
    %cst_39 = arith.constant dense<0.000000e+00> : vector<2x80xf32>
    %156 = tpu.matmul %114, %8, %cst_39 {dimension_numbers = #tpu.dot_dimension_numbers<[1], [0], [0], [1], [0, 0, 1, 1], [], []>} : vector<2x20xf32>, vector<20x80xf32>, vector<2x80xf32> -> vector<2x80xf32>
    %157 = arith.addf %155, %156 : vector<2x80xf32>
    %158 = vector.broadcast %9 : vector<1x80xf32> to vector<2x80xf32>
    %159 = arith.addf %157, %158 : vector<2x80xf32>
    %160 = vector.extract_strided_slice %159 {offsets = [0, 0], sizes = [2, 60], strides = [1, 1]} : vector<2x80xf32> to vector<2x60xf32>
    %161 = arith.negf %160 : vector<2x60xf32>
    %162 = math.exp %161 : vector<2x60xf32>
    %cst_40 = arith.constant 1.000000e+00 : f32
    %163 = vector.broadcast %cst_40 : f32 to vector<2x60xf32>
    %164 = arith.addf %163, %162 : vector<2x60xf32>
    %165 = arith.divf %163, %164 : vector<2x60xf32>
    %166 = vector.extract_strided_slice %159 {offsets = [0, 60], sizes = [2, 20], strides = [1, 1]} : vector<2x80xf32> to vector<2x20xf32>
    %167 = math.tanh %166 : vector<2x20xf32>
    %168 = vector.extract_strided_slice %165 {offsets = [0, 0], sizes = [2, 20], strides = [1, 1]} : vector<2x60xf32> to vector<2x20xf32>
    %169 = vector.extract_strided_slice %165 {offsets = [0, 20], sizes = [2, 20], strides = [1, 1]} : vector<2x60xf32> to vector<2x20xf32>
    %170 = vector.extract_strided_slice %165 {offsets = [0, 40], sizes = [2, 20], strides = [1, 1]} : vector<2x60xf32> to vector<2x20xf32>
    %171 = arith.mulf %169, %112 : vector<2x20xf32>
    %172 = arith.mulf %168, %167 : vector<2x20xf32>
    %173 = arith.addf %171, %172 : vector<2x20xf32>
    %174 = math.tanh %173 : vector<2x20xf32>
    %175 = arith.mulf %170, %174 : vector<2x20xf32>
    %cst_41 = arith.constant dense<0.000000e+00> : vector<2x80xf32>
    %176 = tpu.matmul %175, %10, %cst_41 {dimension_numbers = #tpu.dot_dimension_numbers<[1], [0], [0], [1], [0, 0, 1, 1], [], []>} : vector<2x20xf32>, vector<20x80xf32>, vector<2x80xf32> -> vector<2x80xf32>
    %cst_42 = arith.constant dense<0.000000e+00> : vector<2x80xf32>
    %177 = tpu.matmul %135, %11, %cst_42 {dimension_numbers = #tpu.dot_dimension_numbers<[1], [0], [0], [1], [0, 0, 1, 1], [], []>} : vector<2x20xf32>, vector<20x80xf32>, vector<2x80xf32> -> vector<2x80xf32>
    %178 = arith.addf %176, %177 : vector<2x80xf32>
    %179 = vector.broadcast %12 : vector<1x80xf32> to vector<2x80xf32>
    %180 = arith.addf %178, %179 : vector<2x80xf32>
    %181 = vector.extract_strided_slice %180 {offsets = [0, 0], sizes = [2, 60], strides = [1, 1]} : vector<2x80xf32> to vector<2x60xf32>
    %182 = arith.negf %181 : vector<2x60xf32>
    %183 = math.exp %182 : vector<2x60xf32>
    %cst_43 = arith.constant 1.000000e+00 : f32
    %184 = vector.broadcast %cst_43 : f32 to vector<2x60xf32>
    %185 = arith.addf %184, %183 : vector<2x60xf32>
    %186 = arith.divf %184, %185 : vector<2x60xf32>
    %187 = vector.extract_strided_slice %180 {offsets = [0, 60], sizes = [2, 20], strides = [1, 1]} : vector<2x80xf32> to vector<2x20xf32>
    %188 = math.tanh %187 : vector<2x20xf32>
    %189 = vector.extract_strided_slice %186 {offsets = [0, 0], sizes = [2, 20], strides = [1, 1]} : vector<2x60xf32> to vector<2x20xf32>
    %190 = vector.extract_strided_slice %186 {offsets = [0, 20], sizes = [2, 20], strides = [1, 1]} : vector<2x60xf32> to vector<2x20xf32>
    %191 = vector.extract_strided_slice %186 {offsets = [0, 40], sizes = [2, 20], strides = [1, 1]} : vector<2x60xf32> to vector<2x20xf32>
    %192 = arith.mulf %190, %133 : vector<2x20xf32>
    %193 = arith.mulf %189, %188 : vector<2x20xf32>
    %194 = arith.addf %192, %193 : vector<2x20xf32>
    %195 = math.tanh %194 : vector<2x20xf32>
    %196 = arith.mulf %191, %195 : vector<2x20xf32>
    %197 = vector.extract_strided_slice %5 {offsets = [6, 0], sizes = [2, 80], strides = [1, 1]} : vector<16x80xf32> to vector<2x80xf32>
    %cst_44 = arith.constant dense<0.000000e+00> : vector<2x80xf32>
    %198 = tpu.matmul %154, %6, %cst_44 {dimension_numbers = #tpu.dot_dimension_numbers<[1], [0], [0], [1], [0, 0, 1, 1], [], []>} : vector<2x20xf32>, vector<20x80xf32>, vector<2x80xf32> -> vector<2x80xf32>
    %199 = arith.addf %197, %198 : vector<2x80xf32>
    %200 = vector.extract_strided_slice %199 {offsets = [0, 0], sizes = [2, 60], strides = [1, 1]} : vector<2x80xf32> to vector<2x60xf32>
    %201 = arith.negf %200 : vector<2x60xf32>
    %202 = math.exp %201 : vector<2x60xf32>
    %cst_45 = arith.constant 1.000000e+00 : f32
    %203 = vector.broadcast %cst_45 : f32 to vector<2x60xf32>
    %204 = arith.addf %203, %202 : vector<2x60xf32>
    %205 = arith.divf %203, %204 : vector<2x60xf32>
    %206 = vector.extract_strided_slice %199 {offsets = [0, 60], sizes = [2, 20], strides = [1, 1]} : vector<2x80xf32> to vector<2x20xf32>
    %207 = math.tanh %206 : vector<2x20xf32>
    %208 = vector.extract_strided_slice %205 {offsets = [0, 0], sizes = [2, 20], strides = [1, 1]} : vector<2x60xf32> to vector<2x20xf32>
    %209 = vector.extract_strided_slice %205 {offsets = [0, 20], sizes = [2, 20], strides = [1, 1]} : vector<2x60xf32> to vector<2x20xf32>
    %210 = vector.extract_strided_slice %205 {offsets = [0, 40], sizes = [2, 20], strides = [1, 1]} : vector<2x60xf32> to vector<2x20xf32>
    %211 = arith.mulf %209, %152 : vector<2x20xf32>
    %212 = arith.mulf %208, %207 : vector<2x20xf32>
    %213 = arith.addf %211, %212 : vector<2x20xf32>
    %214 = math.tanh %213 : vector<2x20xf32>
    %215 = arith.mulf %210, %214 : vector<2x20xf32>
    %cst_46 = arith.constant dense<0.000000e+00> : vector<2x80xf32>
    %216 = tpu.matmul %215, %7, %cst_46 {dimension_numbers = #tpu.dot_dimension_numbers<[1], [0], [0], [1], [0, 0, 1, 1], [], []>} : vector<2x20xf32>, vector<20x80xf32>, vector<2x80xf32> -> vector<2x80xf32>
    %cst_47 = arith.constant dense<0.000000e+00> : vector<2x80xf32>
    %217 = tpu.matmul %175, %8, %cst_47 {dimension_numbers = #tpu.dot_dimension_numbers<[1], [0], [0], [1], [0, 0, 1, 1], [], []>} : vector<2x20xf32>, vector<20x80xf32>, vector<2x80xf32> -> vector<2x80xf32>
    %218 = arith.addf %216, %217 : vector<2x80xf32>
    %219 = vector.broadcast %9 : vector<1x80xf32> to vector<2x80xf32>
    %220 = arith.addf %218, %219 : vector<2x80xf32>
    %221 = vector.extract_strided_slice %220 {offsets = [0, 0], sizes = [2, 60], strides = [1, 1]} : vector<2x80xf32> to vector<2x60xf32>
    %222 = arith.negf %221 : vector<2x60xf32>
    %223 = math.exp %222 : vector<2x60xf32>
    %cst_48 = arith.constant 1.000000e+00 : f32
    %224 = vector.broadcast %cst_48 : f32 to vector<2x60xf32>
    %225 = arith.addf %224, %223 : vector<2x60xf32>
    %226 = arith.divf %224, %225 : vector<2x60xf32>
    %227 = vector.extract_strided_slice %220 {offsets = [0, 60], sizes = [2, 20], strides = [1, 1]} : vector<2x80xf32> to vector<2x20xf32>
    %228 = math.tanh %227 : vector<2x20xf32>
    %229 = vector.extract_strided_slice %226 {offsets = [0, 0], sizes = [2, 20], strides = [1, 1]} : vector<2x60xf32> to vector<2x20xf32>
    %230 = vector.extract_strided_slice %226 {offsets = [0, 20], sizes = [2, 20], strides = [1, 1]} : vector<2x60xf32> to vector<2x20xf32>
    %231 = vector.extract_strided_slice %226 {offsets = [0, 40], sizes = [2, 20], strides = [1, 1]} : vector<2x60xf32> to vector<2x20xf32>
    %232 = arith.mulf %230, %173 : vector<2x20xf32>
    %233 = arith.mulf %229, %228 : vector<2x20xf32>
    %234 = arith.addf %232, %233 : vector<2x20xf32>
    %235 = math.tanh %234 : vector<2x20xf32>
    %236 = arith.mulf %231, %235 : vector<2x20xf32>
    %cst_49 = arith.constant dense<0.000000e+00> : vector<2x80xf32>
    %237 = tpu.matmul %236, %10, %cst_49 {dimension_numbers = #tpu.dot_dimension_numbers<[1], [0], [0], [1], [0, 0, 1, 1], [], []>} : vector<2x20xf32>, vector<20x80xf32>, vector<2x80xf32> -> vector<2x80xf32>
    %cst_50 = arith.constant dense<0.000000e+00> : vector<2x80xf32>
    %238 = tpu.matmul %196, %11, %cst_50 {dimension_numbers = #tpu.dot_dimension_numbers<[1], [0], [0], [1], [0, 0, 1, 1], [], []>} : vector<2x20xf32>, vector<20x80xf32>, vector<2x80xf32> -> vector<2x80xf32>
    %239 = arith.addf %237, %238 : vector<2x80xf32>
    %240 = vector.broadcast %12 : vector<1x80xf32> to vector<2x80xf32>
    %241 = arith.addf %239, %240 : vector<2x80xf32>
    %242 = vector.extract_strided_slice %241 {offsets = [0, 0], sizes = [2, 60], strides = [1, 1]} : vector<2x80xf32> to vector<2x60xf32>
    %243 = arith.negf %242 : vector<2x60xf32>
    %244 = math.exp %243 : vector<2x60xf32>
    %cst_51 = arith.constant 1.000000e+00 : f32
    %245 = vector.broadcast %cst_51 : f32 to vector<2x60xf32>
    %246 = arith.addf %245, %244 : vector<2x60xf32>
    %247 = arith.divf %245, %246 : vector<2x60xf32>
    %248 = vector.extract_strided_slice %241 {offsets = [0, 60], sizes = [2, 20], strides = [1, 1]} : vector<2x80xf32> to vector<2x20xf32>
    %249 = math.tanh %248 : vector<2x20xf32>
    %250 = vector.extract_strided_slice %247 {offsets = [0, 0], sizes = [2, 20], strides = [1, 1]} : vector<2x60xf32> to vector<2x20xf32>
    %251 = vector.extract_strided_slice %247 {offsets = [0, 20], sizes = [2, 20], strides = [1, 1]} : vector<2x60xf32> to vector<2x20xf32>
    %252 = vector.extract_strided_slice %247 {offsets = [0, 40], sizes = [2, 20], strides = [1, 1]} : vector<2x60xf32> to vector<2x20xf32>
    %253 = arith.mulf %251, %194 : vector<2x20xf32>
    %254 = arith.mulf %250, %249 : vector<2x20xf32>
    %255 = arith.addf %253, %254 : vector<2x20xf32>
    %256 = math.tanh %255 : vector<2x20xf32>
    %257 = arith.mulf %252, %256 : vector<2x20xf32>
    %258 = vector.extract_strided_slice %5 {offsets = [8, 0], sizes = [2, 80], strides = [1, 1]} : vector<16x80xf32> to vector<2x80xf32>
    %cst_52 = arith.constant dense<0.000000e+00> : vector<2x80xf32>
    %259 = tpu.matmul %215, %6, %cst_52 {dimension_numbers = #tpu.dot_dimension_numbers<[1], [0], [0], [1], [0, 0, 1, 1], [], []>} : vector<2x20xf32>, vector<20x80xf32>, vector<2x80xf32> -> vector<2x80xf32>
    %260 = arith.addf %258, %259 : vector<2x80xf32>
    %261 = vector.extract_strided_slice %260 {offsets = [0, 0], sizes = [2, 60], strides = [1, 1]} : vector<2x80xf32> to vector<2x60xf32>
    %262 = arith.negf %261 : vector<2x60xf32>
    %263 = math.exp %262 : vector<2x60xf32>
    %cst_53 = arith.constant 1.000000e+00 : f32
    %264 = vector.broadcast %cst_53 : f32 to vector<2x60xf32>
    %265 = arith.addf %264, %263 : vector<2x60xf32>
    %266 = arith.divf %264, %265 : vector<2x60xf32>
    %267 = vector.extract_strided_slice %260 {offsets = [0, 60], sizes = [2, 20], strides = [1, 1]} : vector<2x80xf32> to vector<2x20xf32>
    %268 = math.tanh %267 : vector<2x20xf32>
    %269 = vector.extract_strided_slice %266 {offsets = [0, 0], sizes = [2, 20], strides = [1, 1]} : vector<2x60xf32> to vector<2x20xf32>
    %270 = vector.extract_strided_slice %266 {offsets = [0, 20], sizes = [2, 20], strides = [1, 1]} : vector<2x60xf32> to vector<2x20xf32>
    %271 = vector.extract_strided_slice %266 {offsets = [0, 40], sizes = [2, 20], strides = [1, 1]} : vector<2x60xf32> to vector<2x20xf32>
    %272 = arith.mulf %270, %213 : vector<2x20xf32>
    %273 = arith.mulf %269, %268 : vector<2x20xf32>
    %274 = arith.addf %272, %273 : vector<2x20xf32>
    %275 = math.tanh %274 : vector<2x20xf32>
    %276 = arith.mulf %271, %275 : vector<2x20xf32>
    %cst_54 = arith.constant dense<0.000000e+00> : vector<2x80xf32>
    %277 = tpu.matmul %276, %7, %cst_54 {dimension_numbers = #tpu.dot_dimension_numbers<[1], [0], [0], [1], [0, 0, 1, 1], [], []>} : vector<2x20xf32>, vector<20x80xf32>, vector<2x80xf32> -> vector<2x80xf32>
    %cst_55 = arith.constant dense<0.000000e+00> : vector<2x80xf32>
    %278 = tpu.matmul %236, %8, %cst_55 {dimension_numbers = #tpu.dot_dimension_numbers<[1], [0], [0], [1], [0, 0, 1, 1], [], []>} : vector<2x20xf32>, vector<20x80xf32>, vector<2x80xf32> -> vector<2x80xf32>
    %279 = arith.addf %277, %278 : vector<2x80xf32>
    %280 = vector.broadcast %9 : vector<1x80xf32> to vector<2x80xf32>
    %281 = arith.addf %279, %280 : vector<2x80xf32>
    %282 = vector.extract_strided_slice %281 {offsets = [0, 0], sizes = [2, 60], strides = [1, 1]} : vector<2x80xf32> to vector<2x60xf32>
    %283 = arith.negf %282 : vector<2x60xf32>
    %284 = math.exp %283 : vector<2x60xf32>
    %cst_56 = arith.constant 1.000000e+00 : f32
    %285 = vector.broadcast %cst_56 : f32 to vector<2x60xf32>
    %286 = arith.addf %285, %284 : vector<2x60xf32>
    %287 = arith.divf %285, %286 : vector<2x60xf32>
    %288 = vector.extract_strided_slice %281 {offsets = [0, 60], sizes = [2, 20], strides = [1, 1]} : vector<2x80xf32> to vector<2x20xf32>
    %289 = math.tanh %288 : vector<2x20xf32>
    %290 = vector.extract_strided_slice %287 {offsets = [0, 0], sizes = [2, 20], strides = [1, 1]} : vector<2x60xf32> to vector<2x20xf32>
    %291 = vector.extract_strided_slice %287 {offsets = [0, 20], sizes = [2, 20], strides = [1, 1]} : vector<2x60xf32> to vector<2x20xf32>
    %292 = vector.extract_strided_slice %287 {offsets = [0, 40], sizes = [2, 20], strides = [1, 1]} : vector<2x60xf32> to vector<2x20xf32>
    %293 = arith.mulf %291, %234 : vector<2x20xf32>
    %294 = arith.mulf %290, %289 : vector<2x20xf32>
    %295 = arith.addf %293, %294 : vector<2x20xf32>
    %296 = math.tanh %295 : vector<2x20xf32>
    %297 = arith.mulf %292, %296 : vector<2x20xf32>
    %cst_57 = arith.constant dense<0.000000e+00> : vector<2x80xf32>
    %298 = tpu.matmul %297, %10, %cst_57 {dimension_numbers = #tpu.dot_dimension_numbers<[1], [0], [0], [1], [0, 0, 1, 1], [], []>} : vector<2x20xf32>, vector<20x80xf32>, vector<2x80xf32> -> vector<2x80xf32>
    %cst_58 = arith.constant dense<0.000000e+00> : vector<2x80xf32>
    %299 = tpu.matmul %257, %11, %cst_58 {dimension_numbers = #tpu.dot_dimension_numbers<[1], [0], [0], [1], [0, 0, 1, 1], [], []>} : vector<2x20xf32>, vector<20x80xf32>, vector<2x80xf32> -> vector<2x80xf32>
    %300 = arith.addf %298, %299 : vector<2x80xf32>
    %301 = vector.broadcast %12 : vector<1x80xf32> to vector<2x80xf32>
    %302 = arith.addf %300, %301 : vector<2x80xf32>
    %303 = vector.extract_strided_slice %302 {offsets = [0, 0], sizes = [2, 60], strides = [1, 1]} : vector<2x80xf32> to vector<2x60xf32>
    %304 = arith.negf %303 : vector<2x60xf32>
    %305 = math.exp %304 : vector<2x60xf32>
    %cst_59 = arith.constant 1.000000e+00 : f32
    %306 = vector.broadcast %cst_59 : f32 to vector<2x60xf32>
    %307 = arith.addf %306, %305 : vector<2x60xf32>
    %308 = arith.divf %306, %307 : vector<2x60xf32>
    %309 = vector.extract_strided_slice %302 {offsets = [0, 60], sizes = [2, 20], strides = [1, 1]} : vector<2x80xf32> to vector<2x20xf32>
    %310 = math.tanh %309 : vector<2x20xf32>
    %311 = vector.extract_strided_slice %308 {offsets = [0, 0], sizes = [2, 20], strides = [1, 1]} : vector<2x60xf32> to vector<2x20xf32>
    %312 = vector.extract_strided_slice %308 {offsets = [0, 20], sizes = [2, 20], strides = [1, 1]} : vector<2x60xf32> to vector<2x20xf32>
    %313 = vector.extract_strided_slice %308 {offsets = [0, 40], sizes = [2, 20], strides = [1, 1]} : vector<2x60xf32> to vector<2x20xf32>
    %314 = arith.mulf %312, %255 : vector<2x20xf32>
    %315 = arith.mulf %311, %310 : vector<2x20xf32>
    %316 = arith.addf %314, %315 : vector<2x20xf32>
    %317 = math.tanh %316 : vector<2x20xf32>
    %318 = arith.mulf %313, %317 : vector<2x20xf32>
    %319 = vector.extract_strided_slice %5 {offsets = [10, 0], sizes = [2, 80], strides = [1, 1]} : vector<16x80xf32> to vector<2x80xf32>
    %cst_60 = arith.constant dense<0.000000e+00> : vector<2x80xf32>
    %320 = tpu.matmul %276, %6, %cst_60 {dimension_numbers = #tpu.dot_dimension_numbers<[1], [0], [0], [1], [0, 0, 1, 1], [], []>} : vector<2x20xf32>, vector<20x80xf32>, vector<2x80xf32> -> vector<2x80xf32>
    %321 = arith.addf %319, %320 : vector<2x80xf32>
    %322 = vector.extract_strided_slice %321 {offsets = [0, 0], sizes = [2, 60], strides = [1, 1]} : vector<2x80xf32> to vector<2x60xf32>
    %323 = arith.negf %322 : vector<2x60xf32>
    %324 = math.exp %323 : vector<2x60xf32>
    %cst_61 = arith.constant 1.000000e+00 : f32
    %325 = vector.broadcast %cst_61 : f32 to vector<2x60xf32>
    %326 = arith.addf %325, %324 : vector<2x60xf32>
    %327 = arith.divf %325, %326 : vector<2x60xf32>
    %328 = vector.extract_strided_slice %321 {offsets = [0, 60], sizes = [2, 20], strides = [1, 1]} : vector<2x80xf32> to vector<2x20xf32>
    %329 = math.tanh %328 : vector<2x20xf32>
    %330 = vector.extract_strided_slice %327 {offsets = [0, 0], sizes = [2, 20], strides = [1, 1]} : vector<2x60xf32> to vector<2x20xf32>
    %331 = vector.extract_strided_slice %327 {offsets = [0, 20], sizes = [2, 20], strides = [1, 1]} : vector<2x60xf32> to vector<2x20xf32>
    %332 = vector.extract_strided_slice %327 {offsets = [0, 40], sizes = [2, 20], strides = [1, 1]} : vector<2x60xf32> to vector<2x20xf32>
    %333 = arith.mulf %331, %274 : vector<2x20xf32>
    %334 = arith.mulf %330, %329 : vector<2x20xf32>
    %335 = arith.addf %333, %334 : vector<2x20xf32>
    %336 = math.tanh %335 : vector<2x20xf32>
    %337 = arith.mulf %332, %336 : vector<2x20xf32>
    %cst_62 = arith.constant dense<0.000000e+00> : vector<2x80xf32>
    %338 = tpu.matmul %337, %7, %cst_62 {dimension_numbers = #tpu.dot_dimension_numbers<[1], [0], [0], [1], [0, 0, 1, 1], [], []>} : vector<2x20xf32>, vector<20x80xf32>, vector<2x80xf32> -> vector<2x80xf32>
    %cst_63 = arith.constant dense<0.000000e+00> : vector<2x80xf32>
    %339 = tpu.matmul %297, %8, %cst_63 {dimension_numbers = #tpu.dot_dimension_numbers<[1], [0], [0], [1], [0, 0, 1, 1], [], []>} : vector<2x20xf32>, vector<20x80xf32>, vector<2x80xf32> -> vector<2x80xf32>
    %340 = arith.addf %338, %339 : vector<2x80xf32>
    %341 = vector.broadcast %9 : vector<1x80xf32> to vector<2x80xf32>
    %342 = arith.addf %340, %341 : vector<2x80xf32>
    %343 = vector.extract_strided_slice %342 {offsets = [0, 0], sizes = [2, 60], strides = [1, 1]} : vector<2x80xf32> to vector<2x60xf32>
    %344 = arith.negf %343 : vector<2x60xf32>
    %345 = math.exp %344 : vector<2x60xf32>
    %cst_64 = arith.constant 1.000000e+00 : f32
    %346 = vector.broadcast %cst_64 : f32 to vector<2x60xf32>
    %347 = arith.addf %346, %345 : vector<2x60xf32>
    %348 = arith.divf %346, %347 : vector<2x60xf32>
    %349 = vector.extract_strided_slice %342 {offsets = [0, 60], sizes = [2, 20], strides = [1, 1]} : vector<2x80xf32> to vector<2x20xf32>
    %350 = math.tanh %349 : vector<2x20xf32>
    %351 = vector.extract_strided_slice %348 {offsets = [0, 0], sizes = [2, 20], strides = [1, 1]} : vector<2x60xf32> to vector<2x20xf32>
    %352 = vector.extract_strided_slice %348 {offsets = [0, 20], sizes = [2, 20], strides = [1, 1]} : vector<2x60xf32> to vector<2x20xf32>
    %353 = vector.extract_strided_slice %348 {offsets = [0, 40], sizes = [2, 20], strides = [1, 1]} : vector<2x60xf32> to vector<2x20xf32>
    %354 = arith.mulf %352, %295 : vector<2x20xf32>
    %355 = arith.mulf %351, %350 : vector<2x20xf32>
    %356 = arith.addf %354, %355 : vector<2x20xf32>
    %357 = math.tanh %356 : vector<2x20xf32>
    %358 = arith.mulf %353, %357 : vector<2x20xf32>
    %cst_65 = arith.constant dense<0.000000e+00> : vector<2x80xf32>
    %359 = tpu.matmul %358, %10, %cst_65 {dimension_numbers = #tpu.dot_dimension_numbers<[1], [0], [0], [1], [0, 0, 1, 1], [], []>} : vector<2x20xf32>, vector<20x80xf32>, vector<2x80xf32> -> vector<2x80xf32>
    %cst_66 = arith.constant dense<0.000000e+00> : vector<2x80xf32>
    %360 = tpu.matmul %318, %11, %cst_66 {dimension_numbers = #tpu.dot_dimension_numbers<[1], [0], [0], [1], [0, 0, 1, 1], [], []>} : vector<2x20xf32>, vector<20x80xf32>, vector<2x80xf32> -> vector<2x80xf32>
    %361 = arith.addf %359, %360 : vector<2x80xf32>
    %362 = vector.broadcast %12 : vector<1x80xf32> to vector<2x80xf32>
    %363 = arith.addf %361, %362 : vector<2x80xf32>
    %364 = vector.extract_strided_slice %363 {offsets = [0, 0], sizes = [2, 60], strides = [1, 1]} : vector<2x80xf32> to vector<2x60xf32>
    %365 = arith.negf %364 : vector<2x60xf32>
    %366 = math.exp %365 : vector<2x60xf32>
    %cst_67 = arith.constant 1.000000e+00 : f32
    %367 = vector.broadcast %cst_67 : f32 to vector<2x60xf32>
    %368 = arith.addf %367, %366 : vector<2x60xf32>
    %369 = arith.divf %367, %368 : vector<2x60xf32>
    %370 = vector.extract_strided_slice %363 {offsets = [0, 60], sizes = [2, 20], strides = [1, 1]} : vector<2x80xf32> to vector<2x20xf32>
    %371 = math.tanh %370 : vector<2x20xf32>
    %372 = vector.extract_strided_slice %369 {offsets = [0, 0], sizes = [2, 20], strides = [1, 1]} : vector<2x60xf32> to vector<2x20xf32>
    %373 = vector.extract_strided_slice %369 {offsets = [0, 20], sizes = [2, 20], strides = [1, 1]} : vector<2x60xf32> to vector<2x20xf32>
    %374 = vector.extract_strided_slice %369 {offsets = [0, 40], sizes = [2, 20], strides = [1, 1]} : vector<2x60xf32> to vector<2x20xf32>
    %375 = arith.mulf %373, %316 : vector<2x20xf32>
    %376 = arith.mulf %372, %371 : vector<2x20xf32>
    %377 = arith.addf %375, %376 : vector<2x20xf32>
    %378 = math.tanh %377 : vector<2x20xf32>
    %379 = arith.mulf %374, %378 : vector<2x20xf32>
    %380 = vector.extract_strided_slice %5 {offsets = [12, 0], sizes = [2, 80], strides = [1, 1]} : vector<16x80xf32> to vector<2x80xf32>
    %cst_68 = arith.constant dense<0.000000e+00> : vector<2x80xf32>
    %381 = tpu.matmul %337, %6, %cst_68 {dimension_numbers = #tpu.dot_dimension_numbers<[1], [0], [0], [1], [0, 0, 1, 1], [], []>} : vector<2x20xf32>, vector<20x80xf32>, vector<2x80xf32> -> vector<2x80xf32>
    %382 = arith.addf %380, %381 : vector<2x80xf32>
    %383 = vector.extract_strided_slice %382 {offsets = [0, 0], sizes = [2, 60], strides = [1, 1]} : vector<2x80xf32> to vector<2x60xf32>
    %384 = arith.negf %383 : vector<2x60xf32>
    %385 = math.exp %384 : vector<2x60xf32>
    %cst_69 = arith.constant 1.000000e+00 : f32
    %386 = vector.broadcast %cst_69 : f32 to vector<2x60xf32>
    %387 = arith.addf %386, %385 : vector<2x60xf32>
    %388 = arith.divf %386, %387 : vector<2x60xf32>
    %389 = vector.extract_strided_slice %382 {offsets = [0, 60], sizes = [2, 20], strides = [1, 1]} : vector<2x80xf32> to vector<2x20xf32>
    %390 = math.tanh %389 : vector<2x20xf32>
    %391 = vector.extract_strided_slice %388 {offsets = [0, 0], sizes = [2, 20], strides = [1, 1]} : vector<2x60xf32> to vector<2x20xf32>
    %392 = vector.extract_strided_slice %388 {offsets = [0, 20], sizes = [2, 20], strides = [1, 1]} : vector<2x60xf32> to vector<2x20xf32>
    %393 = vector.extract_strided_slice %388 {offsets = [0, 40], sizes = [2, 20], strides = [1, 1]} : vector<2x60xf32> to vector<2x20xf32>
    %394 = arith.mulf %392, %335 : vector<2x20xf32>
    %395 = arith.mulf %391, %390 : vector<2x20xf32>
    %396 = arith.addf %394, %395 : vector<2x20xf32>
    %397 = math.tanh %396 : vector<2x20xf32>
    %398 = arith.mulf %393, %397 : vector<2x20xf32>
    %cst_70 = arith.constant dense<0.000000e+00> : vector<2x80xf32>
    %399 = tpu.matmul %398, %7, %cst_70 {dimension_numbers = #tpu.dot_dimension_numbers<[1], [0], [0], [1], [0, 0, 1, 1], [], []>} : vector<2x20xf32>, vector<20x80xf32>, vector<2x80xf32> -> vector<2x80xf32>
    %cst_71 = arith.constant dense<0.000000e+00> : vector<2x80xf32>
    %400 = tpu.matmul %358, %8, %cst_71 {dimension_numbers = #tpu.dot_dimension_numbers<[1], [0], [0], [1], [0, 0, 1, 1], [], []>} : vector<2x20xf32>, vector<20x80xf32>, vector<2x80xf32> -> vector<2x80xf32>
    %401 = arith.addf %399, %400 : vector<2x80xf32>
    %402 = vector.broadcast %9 : vector<1x80xf32> to vector<2x80xf32>
    %403 = arith.addf %401, %402 : vector<2x80xf32>
    %404 = vector.extract_strided_slice %403 {offsets = [0, 0], sizes = [2, 60], strides = [1, 1]} : vector<2x80xf32> to vector<2x60xf32>
    %405 = arith.negf %404 : vector<2x60xf32>
    %406 = math.exp %405 : vector<2x60xf32>
    %cst_72 = arith.constant 1.000000e+00 : f32
    %407 = vector.broadcast %cst_72 : f32 to vector<2x60xf32>
    %408 = arith.addf %407, %406 : vector<2x60xf32>
    %409 = arith.divf %407, %408 : vector<2x60xf32>
    %410 = vector.extract_strided_slice %403 {offsets = [0, 60], sizes = [2, 20], strides = [1, 1]} : vector<2x80xf32> to vector<2x20xf32>
    %411 = math.tanh %410 : vector<2x20xf32>
    %412 = vector.extract_strided_slice %409 {offsets = [0, 0], sizes = [2, 20], strides = [1, 1]} : vector<2x60xf32> to vector<2x20xf32>
    %413 = vector.extract_strided_slice %409 {offsets = [0, 20], sizes = [2, 20], strides = [1, 1]} : vector<2x60xf32> to vector<2x20xf32>
    %414 = vector.extract_strided_slice %409 {offsets = [0, 40], sizes = [2, 20], strides = [1, 1]} : vector<2x60xf32> to vector<2x20xf32>
    %415 = arith.mulf %413, %356 : vector<2x20xf32>
    %416 = arith.mulf %412, %411 : vector<2x20xf32>
    %417 = arith.addf %415, %416 : vector<2x20xf32>
    %418 = math.tanh %417 : vector<2x20xf32>
    %419 = arith.mulf %414, %418 : vector<2x20xf32>
    %cst_73 = arith.constant dense<0.000000e+00> : vector<2x80xf32>
    %420 = tpu.matmul %419, %10, %cst_73 {dimension_numbers = #tpu.dot_dimension_numbers<[1], [0], [0], [1], [0, 0, 1, 1], [], []>} : vector<2x20xf32>, vector<20x80xf32>, vector<2x80xf32> -> vector<2x80xf32>
    %cst_74 = arith.constant dense<0.000000e+00> : vector<2x80xf32>
    %421 = tpu.matmul %379, %11, %cst_74 {dimension_numbers = #tpu.dot_dimension_numbers<[1], [0], [0], [1], [0, 0, 1, 1], [], []>} : vector<2x20xf32>, vector<20x80xf32>, vector<2x80xf32> -> vector<2x80xf32>
    %422 = arith.addf %420, %421 : vector<2x80xf32>
    %423 = vector.broadcast %12 : vector<1x80xf32> to vector<2x80xf32>
    %424 = arith.addf %422, %423 : vector<2x80xf32>
    %425 = vector.extract_strided_slice %424 {offsets = [0, 0], sizes = [2, 60], strides = [1, 1]} : vector<2x80xf32> to vector<2x60xf32>
    %426 = arith.negf %425 : vector<2x60xf32>
    %427 = math.exp %426 : vector<2x60xf32>
    %cst_75 = arith.constant 1.000000e+00 : f32
    %428 = vector.broadcast %cst_75 : f32 to vector<2x60xf32>
    %429 = arith.addf %428, %427 : vector<2x60xf32>
    %430 = arith.divf %428, %429 : vector<2x60xf32>
    %431 = vector.extract_strided_slice %424 {offsets = [0, 60], sizes = [2, 20], strides = [1, 1]} : vector<2x80xf32> to vector<2x20xf32>
    %432 = math.tanh %431 : vector<2x20xf32>
    %433 = vector.extract_strided_slice %430 {offsets = [0, 0], sizes = [2, 20], strides = [1, 1]} : vector<2x60xf32> to vector<2x20xf32>
    %434 = vector.extract_strided_slice %430 {offsets = [0, 20], sizes = [2, 20], strides = [1, 1]} : vector<2x60xf32> to vector<2x20xf32>
    %435 = vector.extract_strided_slice %430 {offsets = [0, 40], sizes = [2, 20], strides = [1, 1]} : vector<2x60xf32> to vector<2x20xf32>
    %436 = arith.mulf %434, %377 : vector<2x20xf32>
    %437 = arith.mulf %433, %432 : vector<2x20xf32>
    %438 = arith.addf %436, %437 : vector<2x20xf32>
    %439 = math.tanh %438 : vector<2x20xf32>
    %440 = arith.mulf %435, %439 : vector<2x20xf32>
    %441 = vector.extract_strided_slice %5 {offsets = [14, 0], sizes = [2, 80], strides = [1, 1]} : vector<16x80xf32> to vector<2x80xf32>
    %cst_76 = arith.constant dense<0.000000e+00> : vector<2x80xf32>
    %442 = tpu.matmul %398, %6, %cst_76 {dimension_numbers = #tpu.dot_dimension_numbers<[1], [0], [0], [1], [0, 0, 1, 1], [], []>} : vector<2x20xf32>, vector<20x80xf32>, vector<2x80xf32> -> vector<2x80xf32>
    %443 = arith.addf %441, %442 : vector<2x80xf32>
    %444 = vector.extract_strided_slice %443 {offsets = [0, 0], sizes = [2, 60], strides = [1, 1]} : vector<2x80xf32> to vector<2x60xf32>
    %445 = arith.negf %444 : vector<2x60xf32>
    %446 = math.exp %445 : vector<2x60xf32>
    %cst_77 = arith.constant 1.000000e+00 : f32
    %447 = vector.broadcast %cst_77 : f32 to vector<2x60xf32>
    %448 = arith.addf %447, %446 : vector<2x60xf32>
    %449 = arith.divf %447, %448 : vector<2x60xf32>
    %450 = vector.extract_strided_slice %443 {offsets = [0, 60], sizes = [2, 20], strides = [1, 1]} : vector<2x80xf32> to vector<2x20xf32>
    %451 = math.tanh %450 : vector<2x20xf32>
    %452 = vector.extract_strided_slice %449 {offsets = [0, 0], sizes = [2, 20], strides = [1, 1]} : vector<2x60xf32> to vector<2x20xf32>
    %453 = vector.extract_strided_slice %449 {offsets = [0, 20], sizes = [2, 20], strides = [1, 1]} : vector<2x60xf32> to vector<2x20xf32>
    %454 = vector.extract_strided_slice %449 {offsets = [0, 40], sizes = [2, 20], strides = [1, 1]} : vector<2x60xf32> to vector<2x20xf32>
    %455 = arith.mulf %453, %396 : vector<2x20xf32>
    %456 = arith.mulf %452, %451 : vector<2x20xf32>
    %457 = arith.addf %455, %456 : vector<2x20xf32>
    %458 = math.tanh %457 : vector<2x20xf32>
    %459 = arith.mulf %454, %458 : vector<2x20xf32>
    %cst_78 = arith.constant dense<0.000000e+00> : vector<2x80xf32>
    %460 = tpu.matmul %459, %7, %cst_78 {dimension_numbers = #tpu.dot_dimension_numbers<[1], [0], [0], [1], [0, 0, 1, 1], [], []>} : vector<2x20xf32>, vector<20x80xf32>, vector<2x80xf32> -> vector<2x80xf32>
    %cst_79 = arith.constant dense<0.000000e+00> : vector<2x80xf32>
    %461 = tpu.matmul %419, %8, %cst_79 {dimension_numbers = #tpu.dot_dimension_numbers<[1], [0], [0], [1], [0, 0, 1, 1], [], []>} : vector<2x20xf32>, vector<20x80xf32>, vector<2x80xf32> -> vector<2x80xf32>
    %462 = arith.addf %460, %461 : vector<2x80xf32>
    %463 = vector.broadcast %9 : vector<1x80xf32> to vector<2x80xf32>
    %464 = arith.addf %462, %463 : vector<2x80xf32>
    %465 = vector.extract_strided_slice %464 {offsets = [0, 0], sizes = [2, 60], strides = [1, 1]} : vector<2x80xf32> to vector<2x60xf32>
    %466 = arith.negf %465 : vector<2x60xf32>
    %467 = math.exp %466 : vector<2x60xf32>
    %cst_80 = arith.constant 1.000000e+00 : f32
    %468 = vector.broadcast %cst_80 : f32 to vector<2x60xf32>
    %469 = arith.addf %468, %467 : vector<2x60xf32>
    %470 = arith.divf %468, %469 : vector<2x60xf32>
    %471 = vector.extract_strided_slice %464 {offsets = [0, 60], sizes = [2, 20], strides = [1, 1]} : vector<2x80xf32> to vector<2x20xf32>
    %472 = math.tanh %471 : vector<2x20xf32>
    %473 = vector.extract_strided_slice %470 {offsets = [0, 0], sizes = [2, 20], strides = [1, 1]} : vector<2x60xf32> to vector<2x20xf32>
    %474 = vector.extract_strided_slice %470 {offsets = [0, 20], sizes = [2, 20], strides = [1, 1]} : vector<2x60xf32> to vector<2x20xf32>
    %475 = vector.extract_strided_slice %470 {offsets = [0, 40], sizes = [2, 20], strides = [1, 1]} : vector<2x60xf32> to vector<2x20xf32>
    %476 = arith.mulf %474, %417 : vector<2x20xf32>
    %477 = arith.mulf %473, %472 : vector<2x20xf32>
    %478 = arith.addf %476, %477 : vector<2x20xf32>
    %479 = math.tanh %478 : vector<2x20xf32>
    %480 = arith.mulf %475, %479 : vector<2x20xf32>
    %cst_81 = arith.constant dense<0.000000e+00> : vector<2x80xf32>
    %481 = tpu.matmul %480, %10, %cst_81 {dimension_numbers = #tpu.dot_dimension_numbers<[1], [0], [0], [1], [0, 0, 1, 1], [], []>} : vector<2x20xf32>, vector<20x80xf32>, vector<2x80xf32> -> vector<2x80xf32>
    %cst_82 = arith.constant dense<0.000000e+00> : vector<2x80xf32>
    %482 = tpu.matmul %440, %11, %cst_82 {dimension_numbers = #tpu.dot_dimension_numbers<[1], [0], [0], [1], [0, 0, 1, 1], [], []>} : vector<2x20xf32>, vector<20x80xf32>, vector<2x80xf32> -> vector<2x80xf32>
    %483 = arith.addf %481, %482 : vector<2x80xf32>
    %484 = vector.broadcast %12 : vector<1x80xf32> to vector<2x80xf32>
    %485 = arith.addf %483, %484 : vector<2x80xf32>
    %486 = vector.extract_strided_slice %485 {offsets = [0, 0], sizes = [2, 60], strides = [1, 1]} : vector<2x80xf32> to vector<2x60xf32>
    %487 = arith.negf %486 : vector<2x60xf32>
    %488 = math.exp %487 : vector<2x60xf32>
    %cst_83 = arith.constant 1.000000e+00 : f32
    %489 = vector.broadcast %cst_83 : f32 to vector<2x60xf32>
    %490 = arith.addf %489, %488 : vector<2x60xf32>
    %491 = arith.divf %489, %490 : vector<2x60xf32>
    %492 = vector.extract_strided_slice %485 {offsets = [0, 60], sizes = [2, 20], strides = [1, 1]} : vector<2x80xf32> to vector<2x20xf32>
    %493 = math.tanh %492 : vector<2x20xf32>
    %494 = vector.extract_strided_slice %491 {offsets = [0, 0], sizes = [2, 20], strides = [1, 1]} : vector<2x60xf32> to vector<2x20xf32>
    %495 = vector.extract_strided_slice %491 {offsets = [0, 20], sizes = [2, 20], strides = [1, 1]} : vector<2x60xf32> to vector<2x20xf32>
    %496 = vector.extract_strided_slice %491 {offsets = [0, 40], sizes = [2, 20], strides = [1, 1]} : vector<2x60xf32> to vector<2x20xf32>
    %497 = arith.mulf %495, %438 : vector<2x20xf32>
    %498 = arith.mulf %494, %493 : vector<2x20xf32>
    %499 = arith.addf %497, %498 : vector<2x20xf32>
    %500 = math.tanh %499 : vector<2x20xf32>
    %501 = arith.mulf %496, %500 : vector<2x20xf32>
    %c0_84 = arith.constant 0 : index
    %c0_85 = arith.constant 0 : index
    %502 = vector.load %arg10[%c0_84, %c0_85] : memref<1x20xf32, #tpu.memory_space<vmem>>, vector<1x20xf32>
    %503 = vector.broadcast %502 : vector<1x20xf32> to vector<2x20xf32>
    %504 = arith.mulf %501, %503 : vector<2x20xf32>
    %cst_86 = arith.constant dense<0.000000e+00> : vector<2xf32>
    %505 = vector.multi_reduction <add>, %504, %cst_86 [1] : vector<2x20xf32> to vector<2xf32>
    %506 = vector.shape_cast %505 : vector<2xf32> to vector<2x1xf32>
    %c0_87 = arith.constant 0 : index
    %c0_88 = arith.constant 0 : index
    %507 = vector.load %arg11[%c0_87, %c0_88] : memref<1x1xf32, #tpu.memory_space<vmem>>, vector<1x1xf32>
    %508 = vector.broadcast %507 : vector<1x1xf32> to vector<2x1xf32>
    %509 = arith.addf %506, %508 : vector<2x1xf32>
    %c0_89 = arith.constant 0 : index
    %c0_90 = arith.constant 0 : index
    %510 = vector.load %arg12[%c0_89, %c0_90] : memref<2x1xf32, #tpu.memory_space<vmem>>, vector<2x1xf32>
    tpu.vector_store %arg12[%c0_89, %c0_90], %509 {strides = array<i32>} : memref<2x1xf32, #tpu.memory_space<vmem>>, vector<2x1xf32>,
    return
  }
}

</mosaic_0001>

<bundles_post_ra>
// kernel: tpu_custom_call.1
= control target key start
LH: loop header
LB: loop body
LE: loop exit
PB: predicated region body
PF: predicated region fallthrough
CT: control target
= control target key end

     0   :  { %s5683_s0 = inlined_call_operand.vmem [shape: f32[16,6], index: 0, kind: input, shape index: {}]   ;;  %s5684_s1 = inlined_call_operand.hbm [shape: f32[6,80], index: 1, kind: input, shape index: {}]   ;;  %s5685_s2 = inlined_call_operand.vmem [shape: f32[20,80], index: 2, kind: input, shape index: {}]   ;;  %s5686_s3 = inlined_call_operand.vmem [shape: f32[1,80], index: 3, kind: input, shape index: {}]   ;;  %s5687_s4 = inlined_call_operand.hbm [shape: f32[20,80], index: 4, kind: input, shape index: {}]   ;;  %s5688_s5 = inlined_call_operand.hbm [shape: f32[20,80], index: 5, kind: input, shape index: {}]   ;;  %s5689_s6 = inlined_call_operand.vmem [shape: f32[1,80], index: 6, kind: input, shape index: {}]   ;;  %s5690_s7 = inlined_call_operand.vmem [shape: f32[20,80], index: 7, kind: input, shape index: {}]   ;;  %s5691_s8 = inlined_call_operand.hbm [shape: f32[20,80], index: 8, kind: input, shape index: {}]   ;;  %s5692_s9 = inlined_call_operand.vmem [shape: f32[1,80], index: 9, kind: input, shape index: {}]   ;;  %s5693_s10 = inlined_call_operand.vmem [shape: f32[1,20], index: 10, kind: input, shape index: {}]   ;;  %s5694_s11 = inlined_call_operand.<no memory space> [shape: f32[1,1], index: 11, kind: input, shape index: {}]   ;;  %s5695_s12 = inlined_call_operand.vmem [shape: f32[2,1], index: 12, kind: output, shape index: {}]  }
   0x1   :  { %v17_v0 = vstv %s5694_s11 }
   0x2   :  { %18 = vst [vmem:[#allocation2] sm:$0x1] %v17_v0 }
   0x3   :  { %19 = vsyncpa [#allocation4], 0 }
   0x4   :  { %20 = vsyncpa [#allocation6], 0 }
   0x5   :  { %21 = vsyncpa [#allocation9], 0  ;;  %s4899_s23 = smov [#allocation5]   ;;  %s4805_s27 = scalar_lea.hbm %s5687_s4, 384 }
   0x6   :  { %s43_s24 = sshll.u32 %s4899_s23, 4  ;;  %p4806_p0 = scmp.ne.s32.totalorder %s5687_s4, %s4805_s27  ;;  %s44_s24 = int_to_ptr.vmem [resolvable:$true] %s43_s24 }
   0x7   :  { %p4809_p1 = scmp.lt.u32.totalorder %s4805_s27, %s5687_s4 }
   0x9   :  { %p4811_p2 = pnand %p4809_p1, %p4806_p0 }
   0xb   :  { %4814 = shalt.err (!%p4811_p2)
}
   0xc   :  { %s4815_s11 = scalar_lea.vmem %s44_s24, 384  ;;  %p4820_p4 = scmp.lt.s32.totalorder %s44_s24, %s44_s24 }
   0xd   :  { %p4816_p3 = scmp.ne.s32.totalorder %s44_s24, %s4815_s11  ;;  %p4821_p5 = scmp.lt.s32.totalorder %s4815_s11, %s4815_s11 }
   0xf   :  { %p4822_p6 = por %p4821_p5, %p4820_p4 }
  0x11   :  { %p4823_p7 = pnand %p4822_p6, %p4816_p3 }
  0x13   :  { %4826 = shalt.err (!%p4823_p7)
}
  0x14   :  { %s4900_s14 = smov 128   ;;  %s4901_s15 = smov 8  }
  0x15   :  { %49 = dma.hbm_to_vmem [thread:$0]  %s5687_s4, 384, %s44_s24, [#allocation6], %s4900_s14, %s4900_s14, %s4901_s15  }
  0x16   :  { %s4902_s18 = smov [#allocation3]   ;;  %s4903_s20 = smov [#allocation7]  }
  0x17   :  { %s30_s19 = sshll.u32 %s4902_s18, 4  ;;  %s55_s21 = sshll.u32 %s4903_s20, 4  ;;  %s31_s19 = int_to_ptr.vmem [resolvable:$true] %s30_s19  ;;  %s56_s21 = int_to_ptr.vmem [resolvable:$true] %s55_s21 }
  0x18   :  { %s4827_s25 = scalar_lea.hbm %s5684_s1, 128 }
  0x19   :  { %p4828_p8 = scmp.ne.s32.totalorder %s5684_s1, %s4827_s25  ;;  %p4831_p9 = scmp.lt.u32.totalorder %s4827_s25, %s5684_s1 }
  0x1b   :  { %p4833_p10 = pnand %p4831_p9, %p4828_p8 }
  0x1d   :  { %4836 = shalt.err (!%p4833_p10)
}
  0x1e   :  { %s4837_s4 = scalar_lea.vmem %s31_s19, 128  ;;  %p4842_p12 = scmp.lt.s32.totalorder %s31_s19, %s31_s19 }
  0x1f   :  { %p4838_p11 = scmp.ne.s32.totalorder %s31_s19, %s4837_s4  ;;  %p4843_p13 = scmp.lt.s32.totalorder %s4837_s4, %s4837_s4 }
  0x21   :  { %p4844_p0 = por %p4843_p13, %p4842_p12 }
  0x23   :  { %p4845_p1 = pnand %p4844_p0, %p4838_p11 }
  0x25   :  { %4848 = shalt.err (!%p4845_p1)
}
  0x26   :  { %33 = dma.hbm_to_vmem [thread:$0]  %s5684_s1, 128, %s31_s19, [#allocation4]  }
  0x27   :  { %s4849_s16 = scalar_lea.hbm %s5688_s5, 384 }
  0x28   :  { %p4850_p2 = scmp.ne.s32.totalorder %s5688_s5, %s4849_s16  ;;  %p4853_p3 = scmp.lt.u32.totalorder %s4849_s16, %s5688_s5 }
  0x2a   :  { %p4855_p4 = pnand %p4853_p3, %p4850_p2 }
  0x2c   :  { %4858 = shalt.err (!%p4855_p4)
}
  0x2d   :  { %s4859_s23 = scalar_lea.vmem %s56_s21, 384  ;;  %p4864_p6 = scmp.lt.s32.totalorder %s56_s21, %s56_s21 }
  0x2e   :  { %p4860_p5 = scmp.ne.s32.totalorder %s56_s21, %s4859_s23  ;;  %p4865_p7 = scmp.lt.s32.totalorder %s4859_s23, %s4859_s23 }
  0x30   :  { %p4866_p8 = por %p4865_p7, %p4864_p6 }
  0x32   :  { %p4867_p9 = pnand %p4866_p8, %p4860_p5 }
  0x34   :  { %4870 = shalt.err (!%p4867_p9)
}
  0x35   :  { %61 = dma.hbm_to_vmem [thread:$0]  %s5688_s5, 384, %s56_s21, [#allocation6], %s4900_s14, %s4900_s14, %s4901_s15  }
  0x36   :  { %s4904_s25 = smov [#allocation8]   ;;  %s4871_s29 = scalar_lea.hbm %s5691_s8, 384 }
  0x37   :  { %s71_s26 = sshll.u32 %s4904_s25, 4  ;;  %p4872_p10 = scmp.ne.s32.totalorder %s5691_s8, %s4871_s29  ;;  %s72_s26 = int_to_ptr.vmem [resolvable:$true] %s71_s26 }
  0x38   :  { %p4875_p11 = scmp.lt.u32.totalorder %s4871_s29, %s5691_s8 }
  0x3a   :  { %p4877_p12 = pnand %p4875_p11, %p4872_p10 }
  0x3c   :  { %4880 = shalt.err (!%p4877_p12)
}
  0x3d   :  { %s4881_s11 = scalar_lea.vmem %s72_s26, 384  ;;  %p4886_p0 = scmp.lt.s32.totalorder %s72_s26, %s72_s26 }
  0x3e   :  { %p4882_p13 = scmp.ne.s32.totalorder %s72_s26, %s4881_s11  ;;  %p4887_p1 = scmp.lt.s32.totalorder %s4881_s11, %s4881_s11 }
  0x40   :  { %p4888_p2 = por %p4887_p1, %p4886_p0 }
  0x42   :  { %p4889_p3 = pnand %p4888_p2, %p4882_p13 }
  0x44   :  { %4892 = shalt.err (!%p4889_p3)
}
  0x45   :  { %77 = dma.hbm_to_vmem [thread:$0]  %s5691_s8, 384, %s72_s26, [#allocation9], %s4900_s14, %s4900_s14, %s4901_s15  }
  0x46   :  { %4893 = dma.done.wait [#allocation4], 128  }
  0x47   :  { %4894 = vsyncadd [#allocation4], 4294967168 }
  0x48   :  { %4895 = dma.done.wait [#allocation6], 768  }
  0x49   :  { %4896 = vsyncadd [#allocation6], 4294966528 }
  0x4a   :  { %4897 = dma.done.wait [#allocation9], 384  }
  0x4b   :  { %4898 = vsyncadd [#allocation9], 4294966912  ;;  %v4905_v1 = vmov 0.0|0.0   ;;  %vm4906_vm0 = vmmov 0   ;;  %v4907_v2 = vmov 0.0   ;;  %vm113_vm1 = vcmask 1045504  }
  0x4c   :  { %4473 = vmatprep.subr.bf16.mxu1 %v4905_v1  ;;  %4119 = vmatprep.mubr.msk.f32.mxu1 %vm4906_vm0, %v4907_v2  ;;  %vm106_vm2 = vcmask 48128   ;;  %v98_v3 = vld [vmem:[#allocation3] sm:$0x3f]  ;;  %v193_v6 = vld [vmem:[%s5685_s2 + $0x8] sm:$0xff]  ;;  %v5062_v9 = vld [vmem:[%s5685_s2 + $0x10] sm:$0xf] }
  0x4d   :  { %v96_v4 = vld [vmem:[%s5683_s0] sm:$0xff]  ;;  %4108 = vmatprep.subr.msk.mxu0 %vm113_vm1, %v98_v3  ;;  %v97_v7 = vld [vmem:[%s5683_s0 + $0x8] sm:$0xff]  ;;  %vm213_vm3 = vcmask 1043456   ;;  %s4908_s25 = smov 68   ;;  %v196_v34 = vld [vmem:[#allocation5 + $0x8] sm:$0xff]  ;;  %s4910_s26 = smov 88  }
  0x4e   :  { %v192_v5 = vld [vmem:[%s5685_s2] sm:$0xff]  ;;  %4110 = vmatprep.mubr.msk.f32.mxu0 %vm106_vm2, %v96_v4  ;;  %4109 = vmatpush3.msk.msra.mxu0 %vm113_vm1, %v98_v3  ;;  %v199_v29 = vld [vmem:[#allocation7 + $0x8] sm:$0xff]  ;;  %v5089_v36 = vld [vmem:[#allocation7 + $0x10] sm:$0xf]  ;;  %vm209_vm4 = vcmask 162816   ;;  %s4911_s20 = smov 40  }
  0x4f   :  { %v5052_v8 = vpack.c.bf16 %v193_v6, %v192_v5  ;;  %4111 = vmatmul.mubr.msk.f32.vlgmr.msra.gmra.mrb[0].mxu0 %vm106_vm2, %v97_v7  ;;  %4476 = vmatprep.subr.bf16.mxu0 %v4905_v1  ;;  %v3836_v10 = vld [vmem:[%s5686_s3] ss:$0 sm:$0xff]  ;;  %s4909_s3 = smov 20   ;;  %v198_v28 = vld [vmem:[#allocation7] sm:$0xff]  ;;  %v195_v33 = vld [vmem:[#allocation5] sm:$0xff]  ;;  %vm3815_vm5 = vcmask 156672  }
  0x50   :  { %4128 = vmatprep.mubr.msk.f32.mxu0 %vm4906_vm0, %v4907_v2  ;;  %v5083_v30 = vpack.c.bf16 %v199_v29, %v198_v28  ;;  %v205_v31 = vld [vmem:[#allocation8] sm:$0xff]  ;;  %v206_v32 = vld [vmem:[#allocation8 + $0x8] sm:$0xff]  ;;  %v5086_v35 = vpack.c.bf16 %v196_v34, %v195_v33  ;;  %v5105_v40 = vld [vmem:[#allocation8 + $0x10] sm:$0xf]  ;;  %vm3827_vm6 = vcmask 1024  }
  0x51   :  { %4475 = vmatpush3.bf16.msra.mxu1 %v5052_v8  ;;  %v5091_v37 = vpack.c.bf16 %v206_v32, %v205_v31  ;;  %v5097_v38 = vld [vmem:[#allocation5 + $0x10] sm:$0xf]  ;;  %v5139_v48 = vld [vmem:[%s5689_s6] ss:$0 sm:$0xff] }
  0x52   :  { %4117 = vmatprep.subr.mxu1 %v4907_v2  ;;  %4478 = vmatpush3.bf16.msra.mxu0 %v5083_v30  ;;  %v5206_v34 = vld [vmem:[%s5692_s9] ss:$0 sm:$0xff] }
  0x53   :  { %4126 = vmatprep.subr.mxu0 %v4907_v2 }
  0x55   :  { %4118 = vmatpush3.msk.msra.mxu1 %vm213_vm3, %v5062_v9 }
  0x56   :  { %4120 = vmatmul.mubr.f32.vlgmr.msra.gmra.mrb[0].mxu1 %v4907_v2  ;;  %4479 = vmatprep.subr.bf16.mxu1 %v4905_v1 }
  0x57   :  { %4137 = vmatprep.mubr.msk.f32.mxu1 %vm4906_vm0, %v4907_v2  ;;  %4481 = vmatpush3.bf16.msra.mxu1 %v5086_v35 }
  0x58   :  { %4135 = vmatprep.subr.mxu1 %v4907_v2  ;;  %4127 = vmatpush3.msk.msra.mxu0 %vm213_vm3, %v5089_v36 }
  0x59   :  { %4482 = vmatprep.subr.bf16.mxu0 %v4905_v1  ;;  %4129 = vmatmul.mubr.f32.vlgmr.msra.gmra.mrb[2].mxu0 %v4907_v2 }
  0x5a   :  { %4484 = vmatpush3.bf16.msra.mxu0 %v5091_v37  ;;  %4146 = vmatprep.mubr.msk.f32.mxu0 %vm4906_vm0, %v4907_v2 }
  0x5b   :  { %4144 = vmatprep.subr.mxu0 %v4907_v2  ;;  %4136 = vmatpush3.msk.msra.mxu1 %vm213_vm3, %v5097_v38 }
  0x5c   :  { %4485 = vmatprep.subr.bf16.mxu1 %v4905_v1 }
  0x5e   :  { %4145 = vmatpush3.msk.msra.mxu0 %vm213_vm3, %v5105_v40 }
  0x5f   :  { %4488 = vmatprep.subr.bf16.mxu0 %v4905_v1  ;;  %4147 = vmatmul.mubr.f32.vlgmr.msra.gmra.mrb[4].mxu0 %v4907_v2 }
  0x60   :  { %4490 = vmatpush3.bf16.msra.mxu0 %v5052_v8  ;;  %4164 = vmatprep.mubr.msk.f32.mxu0 %vm4906_vm0, %v4907_v2 }
  0x61   :  { %4162 = vmatprep.subr.mxu0 %v4907_v2 }
  0x64   :  { %4163 = vmatpush3.msk.msra.mxu0 %vm213_vm3, %v5062_v9 }
  0x65   :  { %4494 = vmatprep.subr.bf16.mxu0 %v4905_v1 }
 0x122   :  { %v4112_v11 = vpop.f32.mrb[0].mxu0 }
 0x123   :  { %v5073_v12 = vadd.f32 %v4112_v11, %v3836_v10  ;;  %v183_v13 = vpop.f32.mrb[1].mxu0 }
 0x124   :  { %v5075_v14 = vadd.f32 %v3836_v10, %v183_v13 }
 0x129   :  { %v283_v15 = vpop.f32.mrb[0].mxu1 }
 0x12a   :  { %v287_v16 = vadd.f32 %v283_v15, %v5075_v14  ;;  %v4121_v17 = vpop.f32.mrb[1].mxu1 }
 0x12c   :  { %4606 = vtanh.f32 %v287_v16  ;;  %v3841_v19 = vmul.f32 -1.442695, %v287_v16  ;;  %v381_v43 = vpop.f32.mrb[2].mxu0 }
 0x12d   :  { %v4130_v44 = vpop.f32.mrb[3].mxu0 }
 0x12e   :  { %4608 = vpow2.f32 %v3841_v19 }
 0x132   :  { %v5123_v45 = vpop.f32.mrb[4].mxu0 }
 0x133   :  { %v4148_v46 = vpop.f32.mrb[5].mxu0 }
 0x136   :  { %v4607_v18 = vpop.eup %4606 }
 0x137   :  { %297 = vrot.lane.b32.xlu0 %v4607_v18, %s4908_s25 }
 0x138   :  { %v4609_v20 = vpop.eup %4608 }
 0x139   :  { %v291_v21 = vadd.f32 1.0, %v4609_v20  ;;  %v202_v20 = vld [vmem:[%s5690_s7] sm:$0xff] }
 0x13b   :  { %4610 = vrcp.f32 %v291_v21  ;;  %v203_v21 = vld [vmem:[%s5690_s7 + $0x8] sm:$0xff] }
 0x145   :  { %v4611_v22 = vpop.eup %4610 }
 0x146   :  { %v295_v25 = vmul.f32 0.0, %v4611_v22 }
 0x1a9   :  { %v298_v23 = vpop.permute.xlu0 %297 }
 0x1aa   :  { %v300_v24 = vmul.f32 %v4611_v22, %v298_v23  ;;  %v5167_v23 = vld [vmem:[%s5690_s7 + $0x10] sm:$0xf] }
 0x1ac   :  { %302 = vrot.lane.b32.xlu0 %v300_v24, %s4909_s3 }
 0x21e   :  { %v303_v26 = vpop.permute.xlu0 %302 }
 0x21f   :  { %v5080_v27 = vadd.f32 %v303_v26, %v295_v25 }
 0x221   :  { %4612 = vtanh.f32 %v5080_v27  ;;  %v758_v11 = vrot.slane %v5080_v27, 6 }
 0x22b   :  { %v4613_v39 = vpop.eup %4612 }
 0x22c   :  { %308 = vrot.lane.b32.xlu1 %v4613_v39, %s4909_s3 }
 0x29e   :  { %v309_v41 = vpop.permute.xlu1 %308 }
 0x29f   :  { %v311_v42 = vmul.f32 %v4611_v22, %v309_v41  ;;  %v5160_v22 = vpack.c.bf16 %v203_v21, %v202_v20 }
 0x2a1   :  { %386 = vrot.lane.b32.xlu1 %v311_v42, %s4910_s26 }
 0x313   :  { %v387_v47 = vpop.permute.xlu1 %386 }
 0x314   :  { %4138 = vmatmul.mubr.msk.f32.vlgmr.msra.gmra.mrb[2].mxu1 %vm209_vm4, %v387_v47  ;;  %4165 = vmatmul.mubr.msk.f32.vlgmr.msra.gmra.mrb[6].mxu0 %vm209_vm4, %v387_v47 }
 0x315   :  { %4496 = vmatpush3.bf16.msra.mxu0 %v5086_v35  ;;  %4155 = vmatprep.mubr.msk.f32.mxu1 %vm4906_vm0, %v4907_v2 }
 0x316   :  { %4180 = vmatprep.subr.mxu0 %v4907_v2  ;;  %4182 = vmatprep.mubr.msk.f32.mxu0 %vm4906_vm0, %v4907_v2 }
 0x317   :  { %4487 = vmatpush3.bf16.msra.mxu1 %v5160_v22 }
 0x318   :  { %4153 = vmatprep.subr.mxu1 %v4907_v2 }
 0x319   :  { %4181 = vmatpush3.msk.msra.mxu0 %vm213_vm3, %v5097_v38 }
 0x31a   :  { %4500 = vmatprep.subr.bf16.mxu0 %v4905_v1 }
 0x31b   :  { %4154 = vmatpush3.msk.msra.mxu1 %vm213_vm3, %v5167_v23 }
 0x31c   :  { %4491 = vmatprep.subr.bf16.mxu1 %v4905_v1 }
 0x3e7   :  { %v459_v49 = vpop.f32.mrb[2].mxu1  ;;  %v742_v50 = vpop.f32.mrb[6].mxu0 }
 0x3e8   :  { %v460_v51 = vadd.f32 %v459_v49, %v381_v43  ;;  %v747_v52 = vrot.slane %v742_v50, 6  ;;  %v4139_v53 = vpop.f32.mrb[3].mxu1  ;;  %v4166_v54 = vpop.f32.mrb[7].mxu0 }
 0x3ea   :  { %v469_v55 = vadd.f32 %v5139_v48, %v460_v51  ;;  %v749_v56 = vadd.f32 %v747_v52, %v5075_v14 }
 0x3ec   :  { %4614 = vtanh.f32 %v469_v55  ;;  %v3846_v59 = vmul.f32 -1.442695, %v469_v55  ;;  %v3854_v60 = vmul.f32 -1.442695, %v749_v56 }
 0x3ed   :  { %4616 = vtanh.f32 %v749_v56 }
 0x3ee   :  { %4618 = vpow2.f32 %v3846_v59 }
 0x3ef   :  { %4620 = vpow2.f32 %v3854_v60 }
 0x3f6   :  { %v4615_v57 = vpop.eup %4614 }
 0x3f7   :  { %v4617_v58 = vpop.eup %4616  ;;  %479 = vrot.lane.b32.xlu0 %v4615_v57, %s4908_s25 }
 0x3f8   :  { %762 = vrot.lane.b32.xlu1 %v4617_v58, %s4908_s25  ;;  %v4619_v61 = vpop.eup %4618 }
 0x3f9   :  { %v4621_v62 = vpop.eup %4620  ;;  %v473_v63 = vadd.f32 1.0, %v4619_v61 }
 0x3fa   :  { %v753_v0 = vadd.f32 1.0, %v4621_v62 }
 0x3fb   :  { %4622 = vrcp.f32 %v473_v63 }
 0x3fc   :  { %4624 = vrcp.f32 %v753_v0 }
 0x405   :  { %v4623_v3 = vpop.eup %4622 }
 0x406   :  { %v4625_v5 = vpop.eup %4624  ;;  %v477_v13 = vmul.f32 0.0, %v4623_v3 }
 0x407   :  { %v760_v15 = vmul.f32 %v4625_v5, %v758_v11 }
 0x469   :  { %v480_v4 = vpop.permute.xlu0 %479 }
 0x46a   :  { %v763_v6 = vpop.permute.xlu1 %762  ;;  %v482_v7 = vmul.f32 %v4623_v3, %v480_v4 }
 0x46b   :  { %v765_v10 = vmul.f32 %v4625_v5, %v763_v6 }
 0x46c   :  { %484 = vrot.lane.b32.xlu0 %v482_v7, %s4909_s3 }
 0x46d   :  { %767 = vrot.lane.b32.xlu1 %v765_v10, %s4909_s3 }
 0x4de   :  { %v485_v16 = vpop.permute.xlu0 %484 }
 0x4df   :  { %v768_v17 = vpop.permute.xlu1 %767  ;;  %v5148_v18 = vadd.f32 %v485_v16, %v477_v13 }
 0x4e0   :  { %v5150_v19 = vadd.f32 %v768_v17, %v760_v15 }
 0x4e1   :  { %4626 = vtanh.f32 %v5148_v18 }
 0x4e2   :  { %4628 = vtanh.f32 %v5150_v19 }
 0x4eb   :  { %v4627_v24 = vpop.eup %4626 }
 0x4ec   :  { %v4629_v25 = vpop.eup %4628  ;;  %490 = vrot.lane.b32.xlu0 %v4627_v24, %s4909_s3 }
 0x4ed   :  { %773 = vrot.lane.b32.xlu1 %v4629_v25, %s4909_s3 }
 0x55e   :  { %v491_v26 = vpop.permute.xlu0 %490 }
 0x55f   :  { %v774_v27 = vpop.permute.xlu1 %773  ;;  %v493_v28 = vmul.f32 %v4623_v3, %v491_v26 }
 0x560   :  { %v776_v29 = vmul.f32 %v4625_v5, %v774_v27 }
 0x561   :  { %568 = vrot.lane.b32.xlu0 %v493_v28, %s4910_s26 }
 0x562   :  { %v848_v31 = vrot.slane %v776_v29, 2 }
 0x564   :  { %849 = vrot.lane.b32.xlu1 %v848_v31, %s4910_s26 }
 0x5d3   :  { %v569_v32 = vpop.permute.xlu0 %568 }
 0x5d4   :  { %4156 = vmatmul.mubr.msk.f32.vlgmr.msra.gmra.mrb[4].mxu1 %vm209_vm4, %v569_v32 }
 0x5d5   :  { %4493 = vmatpush3.bf16.msra.mxu1 %v5083_v30  ;;  %4173 = vmatprep.mubr.msk.f32.mxu1 %vm4906_vm0, %v4907_v2 }
 0x5d6   :  { %v5180_v33 = vpop.permute.xlu1 %849  ;;  %4171 = vmatprep.subr.mxu1 %v4907_v2 }
 0x5d7   :  { %4183 = vmatmul.mubr.msk.f32.vlgmr.msra.gmra.mrb[8].mxu0 %vm209_vm4, %v5180_v33 }
 0x5d8   :  { %4502 = vmatpush3.bf16.msra.mxu0 %v5160_v22  ;;  %4200 = vmatprep.mubr.msk.f32.mxu0 %vm4906_vm0, %v4907_v2 }
 0x5d9   :  { %4172 = vmatpush3.msk.msra.mxu1 %vm213_vm3, %v5089_v36  ;;  %4198 = vmatprep.subr.mxu0 %v4907_v2 }
 0x5da   :  { %4174 = vmatmul.mubr.msk.f32.vlgmr.msra.gmra.mrb[6].mxu1 %vm209_vm4, %v569_v32  ;;  %4497 = vmatprep.subr.bf16.mxu1 %v4905_v1 }
 0x5db   :  { %4499 = vmatpush3.bf16.msra.mxu1 %v5091_v37  ;;  %4191 = vmatprep.mubr.msk.f32.mxu1 %vm4906_vm0, %v4907_v2 }
 0x5dc   :  { %4189 = vmatprep.subr.mxu1 %v4907_v2  ;;  %4199 = vmatpush3.msk.msra.mxu0 %vm213_vm3, %v5167_v23 }
 0x5dd   :  { %4506 = vmatprep.subr.bf16.mxu0 %v4905_v1 }
 0x5df   :  { %4190 = vmatpush3.msk.msra.mxu1 %vm213_vm3, %v5105_v40 }
 0x5e0   :  { %4503 = vmatprep.subr.bf16.mxu1 %v4905_v1 }
 0x6a7   :  { %v641_v39 = vpop.f32.mrb[4].mxu1 }
 0x6a8   :  { %v642_v41 = vadd.f32 %v641_v39, %v5123_v45  ;;  %v4157_v42 = vpop.f32.mrb[5].mxu1 }
 0x6aa   :  { %v651_v43 = vadd.f32 %v5206_v34, %v642_v41  ;;  %v919_v44 = vpop.f32.mrb[8].mxu0 }
 0x6ab   :  { %v4184_v46 = vpop.f32.mrb[9].mxu0 }
 0x6ac   :  { %4630 = vtanh.f32 %v651_v43  ;;  %v3851_v54 = vmul.f32 -1.442695, %v651_v43 }
 0x6ad   :  { %v843_v47 = vpop.f32.mrb[6].mxu1 }
 0x6ae   :  { %v920_v49 = vadd.f32 %v919_v44, %v843_v47  ;;  %v4175_v50 = vpop.f32.mrb[7].mxu1 }
 0x6b0   :  { %v923_v51 = vadd.f32 %v5139_v48, %v920_v49 }
 0x6b2   :  { %4632 = vtanh.f32 %v923_v51  ;;  %v3859_v45 = vmul.f32 -1.442695, %v923_v51 }
 0x6b3   :  { %4634 = vpow2.f32 %v3851_v54 }
 0x6b4   :  { %4636 = vpow2.f32 %v3859_v45 }
 0x6b6   :  { %v4631_v52 = vpop.eup %4630 }
 0x6b7   :  { %661 = vrot.lane.b32.xlu0 %v4631_v52, %s4908_s25 }
 0x6bc   :  { %v4633_v53 = vpop.eup %4632 }
 0x6bd   :  { %933 = vrot.lane.b32.xlu1 %v4633_v53, %s4908_s25  ;;  %v4635_v55 = vpop.eup %4634 }
 0x6be   :  { %v655_v56 = vadd.f32 1.0, %v4635_v55  ;;  %v4637_v57 = vpop.eup %4636 }
 0x6bf   :  { %v927_v58 = vadd.f32 1.0, %v4637_v57 }
 0x6c0   :  { %4638 = vrcp.f32 %v655_v56 }
 0x6c1   :  { %4640 = vrcp.f32 %v927_v58  ;;  %v1205_v58 = vrot.slane %v5150_v19, 6 }
 0x6ca   :  { %v4639_v59 = vpop.eup %4638 }
 0x6cb   :  { %v4641_v62 = vpop.eup %4640  ;;  %v659_v3 = vmul.f32 0.0, %v4639_v59 }
 0x6cc   :  { %v931_v6 = vmul.f32 %v4641_v62, %v5148_v18 }
 0x729   :  { %v662_v60 = vpop.permute.xlu0 %661 }
 0x72a   :  { %v664_v61 = vmul.f32 %v4639_v59, %v662_v60 }
 0x72c   :  { %666 = vrot.lane.b32.xlu0 %v664_v61, %s4909_s3 }
 0x72f   :  { %v934_v63 = vpop.permute.xlu1 %933 }
 0x730   :  { %v936_v0 = vmul.f32 %v4641_v62, %v934_v63 }
 0x732   :  { %938 = vrot.lane.b32.xlu1 %v936_v0, %s4909_s3 }
 0x79e   :  { %v667_v4 = vpop.permute.xlu0 %666 }
 0x79f   :  { %v5215_v5 = vadd.f32 %v667_v4, %v659_v3 }
 0x7a1   :  { %4642 = vtanh.f32 %v5215_v5 }
 0x7a4   :  { %v939_v7 = vpop.permute.xlu1 %938 }
 0x7a5   :  { %v5219_v10 = vadd.f32 %v939_v7, %v931_v6 }
 0x7a7   :  { %4644 = vtanh.f32 %v5219_v10 }
 0x7ab   :  { %v4643_v11 = vpop.eup %4642 }
 0x7ac   :  { %672 = vrot.lane.b32.xlu0 %v4643_v11, %s4909_s3 }
 0x7b1   :  { %v4645_v13 = vpop.eup %4644 }
 0x7b2   :  { %944 = vrot.lane.b32.xlu1 %v4645_v13, %s4909_s3 }
 0x81e   :  { %v673_v15 = vpop.permute.xlu0 %672 }
 0x81f   :  { %v675_v16 = vmul.f32 %v4639_v59, %v673_v15 }
 0x821   :  { %949 = vrot.lane.b32.xlu0 %v675_v16, %s4910_s26 }
 0x824   :  { %v945_v17 = vpop.permute.xlu1 %944 }
 0x825   :  { %v947_v20 = vmul.f32 %v4641_v62, %v945_v17 }
 0x827   :  { %1024 = vrot.lane.b32.xlu1 %v947_v20, %s4910_s26 }
 0x893   :  { %v950_v18 = vpop.permute.xlu0 %949 }
 0x894   :  { %4192 = vmatmul.mubr.msk.f32.vlgmr.msra.gmra.mrb[8].mxu1 %vm209_vm4, %v950_v18 }
 0x895   :  { %4505 = vmatpush3.bf16.msra.mxu1 %v5052_v8  ;;  %4209 = vmatprep.mubr.msk.f32.mxu1 %vm4906_vm0, %v4907_v2 }
 0x896   :  { %4207 = vmatprep.subr.mxu1 %v4907_v2 }
 0x899   :  { %4208 = vmatpush3.msk.msra.mxu1 %vm213_vm3, %v5062_v9  ;;  %v1025_v21 = vpop.permute.xlu1 %1024 }
 0x89a   :  { %4201 = vmatmul.mubr.msk.f32.vlgmr.msra.gmra.mrb[10].mxu0 %vm209_vm4, %v1025_v21  ;;  %4210 = vmatmul.mubr.msk.f32.vlgmr.msra.gmra.mrb[10].mxu1 %vm209_vm4, %v5180_v33 }
 0x89b   :  { %4508 = vmatpush3.bf16.msra.mxu0 %v5083_v30  ;;  %4218 = vmatprep.mubr.msk.f32.mxu0 %vm4906_vm0, %v4907_v2 }
 0x89c   :  { %4216 = vmatprep.subr.mxu0 %v4907_v2  ;;  %4509 = vmatprep.subr.bf16.mxu1 %v4905_v1 }
 0x89d   :  { %4511 = vmatpush3.bf16.msra.mxu1 %v5086_v35  ;;  %4227 = vmatprep.mubr.msk.f32.mxu1 %vm4906_vm0, %v4907_v2 }
 0x89e   :  { %4225 = vmatprep.subr.mxu1 %v4907_v2 }
 0x89f   :  { %4217 = vmatpush3.msk.msra.mxu0 %vm213_vm3, %v5089_v36 }
 0x8a0   :  { %4219 = vmatmul.mubr.msk.f32.vlgmr.msra.gmra.mrb[12].mxu0 %vm209_vm4, %v1025_v21  ;;  %4512 = vmatprep.subr.bf16.mxu0 %v4905_v1 }
 0x8a1   :  { %4514 = vmatpush3.bf16.msra.mxu0 %v5091_v37  ;;  %4236 = vmatprep.mubr.msk.f32.mxu0 %vm4906_vm0, %v4907_v2 }
 0x8a2   :  { %4234 = vmatprep.subr.mxu0 %v4907_v2  ;;  %4226 = vmatpush3.msk.msra.mxu1 %vm213_vm3, %v5097_v38 }
 0x8a3   :  { %4515 = vmatprep.subr.bf16.mxu1 %v4905_v1 }
 0x8a5   :  { %4235 = vmatpush3.msk.msra.mxu0 %vm213_vm3, %v5105_v40 }
 0x8a6   :  { %4518 = vmatprep.subr.bf16.mxu0 %v4905_v1 }
 0x967   :  { %v1019_v24 = vpop.f32.mrb[8].mxu1 }
 0x968   :  { %v4193_v25 = vpop.f32.mrb[9].mxu1 }
 0x96d   :  { %v1094_v26 = vpop.f32.mrb[10].mxu0  ;;  %v1189_v27 = vpop.f32.mrb[10].mxu1 }
 0x96e   :  { %v1095_v28 = vadd.f32 %v1094_v26, %v1019_v24  ;;  %v1194_v29 = vrot.slane %v1189_v27, 4  ;;  %v4202_v31 = vpop.f32.mrb[11].mxu0  ;;  %v4211_v32 = vpop.f32.mrb[11].mxu1 }
 0x970   :  { %v1098_v33 = vadd.f32 %v5206_v34, %v1095_v28  ;;  %v1196_v39 = vadd.f32 %v1194_v29, %v5075_v14 }
 0x972   :  { %4646 = vtanh.f32 %v1098_v33  ;;  %v3864_v46 = vmul.f32 -1.442695, %v1098_v33  ;;  %v3867_v47 = vmul.f32 -1.442695, %v1196_v39 }
 0x973   :  { %4648 = vtanh.f32 %v1196_v39  ;;  %v5261_v41 = vpop.f32.mrb[12].mxu0 }
 0x974   :  { %v4220_v42 = vpop.f32.mrb[13].mxu0  ;;  %4650 = vpow2.f32 %v3864_v46 }
 0x975   :  { %4652 = vpow2.f32 %v3867_v47 }
 0x97c   :  { %v4647_v43 = vpop.eup %4646 }
 0x97d   :  { %v4649_v44 = vpop.eup %4648  ;;  %1108 = vrot.lane.b32.xlu0 %v4647_v43, %s4908_s25 }
 0x97e   :  { %1209 = vrot.lane.b32.xlu1 %v4649_v44, %s4908_s25  ;;  %v4651_v49 = vpop.eup %4650 }
 0x97f   :  { %v4653_v50 = vpop.eup %4652  ;;  %v1102_v51 = vadd.f32 1.0, %v4651_v49 }
 0x980   :  { %v1200_v52 = vadd.f32 1.0, %v4653_v50 }
 0x981   :  { %4654 = vrcp.f32 %v1102_v51 }
 0x982   :  { %4656 = vrcp.f32 %v1200_v52 }
 0x98b   :  { %v4655_v53 = vpop.eup %4654 }
 0x98c   :  { %v4657_v45 = vpop.eup %4656  ;;  %v1106_v59 = vmul.f32 %v4655_v53, %v5215_v5 }
 0x98d   :  { %v1207_v61 = vmul.f32 %v4657_v45, %v1205_v58 }
 0x9ef   :  { %v1109_v54 = vpop.permute.xlu0 %1108 }
 0x9f0   :  { %v1111_v55 = vmul.f32 %v4655_v53, %v1109_v54  ;;  %v1210_v56 = vpop.permute.xlu1 %1209 }
 0x9f1   :  { %v1212_v57 = vmul.f32 %v4657_v45, %v1210_v56 }
 0x9f2   :  { %1113 = vrot.lane.b32.xlu0 %v1111_v55, %s4909_s3 }
 0x9f3   :  { %1214 = vrot.lane.b32.xlu1 %v1212_v57, %s4909_s3 }
 0xa64   :  { %v1114_v60 = vpop.permute.xlu0 %1113 }
 0xa65   :  { %v5269_v62 = vadd.f32 %v1114_v60, %v1106_v59  ;;  %v1215_v63 = vpop.permute.xlu1 %1214 }
 0xa66   :  { %v5271_v0 = vadd.f32 %v1215_v63, %v1207_v61 }
 0xa67   :  { %4658 = vtanh.f32 %v5269_v62 }
 0xa68   :  { %4660 = vtanh.f32 %v5271_v0  ;;  %v1652_v52 = vrot.slane %v5271_v0, 6 }
 0xa71   :  { %v4659_v3 = vpop.eup %4658 }
 0xa72   :  { %v4661_v4 = vpop.eup %4660  ;;  %1119 = vrot.lane.b32.xlu0 %v4659_v3, %s4909_s3 }
 0xa73   :  { %1220 = vrot.lane.b32.xlu1 %v4661_v4, %s4909_s3 }
 0xae4   :  { %v1120_v19 = vpop.permute.xlu0 %1119 }
 0xae5   :  { %v1122_v6 = vmul.f32 %v4655_v53, %v1120_v19  ;;  %v1221_v5 = vpop.permute.xlu1 %1220 }
 0xae6   :  { %v1223_v7 = vmul.f32 %v4657_v45, %v1221_v5 }
 0xae7   :  { %1396 = vrot.lane.b32.xlu0 %v1122_v6, %s4910_s26 }
 0xae8   :  { %v1295_v11 = vrot.slane %v1223_v7, 4 }
 0xaea   :  { %1296 = vrot.lane.b32.xlu1 %v1295_v11, %s4910_s26 }
 0xb59   :  { %v1397_v13 = vpop.permute.xlu0 %1396 }
 0xb5a   :  { %4237 = vmatmul.mubr.msk.f32.vlgmr.msra.gmra.mrb[14].mxu0 %vm209_vm4, %v1397_v13 }
 0xb5b   :  { %4520 = vmatpush3.bf16.msra.mxu0 %v5052_v8  ;;  %4254 = vmatprep.mubr.msk.f32.mxu0 %vm4906_vm0, %v4907_v2 }
 0xb5c   :  { %v1297_v15 = vpop.permute.xlu1 %1296  ;;  %4252 = vmatprep.subr.mxu0 %v4907_v2 }
 0xb5d   :  { %4228 = vmatmul.mubr.msk.f32.vlgmr.msra.gmra.mrb[12].mxu1 %vm209_vm4, %v1297_v15 }
 0xb5e   :  { %4517 = vmatpush3.bf16.msra.mxu1 %v5160_v22  ;;  %4245 = vmatprep.mubr.msk.f32.mxu1 %vm4906_vm0, %v4907_v2 }
 0xb5f   :  { %4253 = vmatpush3.msk.msra.mxu0 %vm213_vm3, %v5062_v9  ;;  %4243 = vmatprep.subr.mxu1 %v4907_v2 }
 0xb60   :  { %4255 = vmatmul.mubr.msk.f32.vlgmr.msra.gmra.mrb[16].mxu0 %vm209_vm4, %v1297_v15  ;;  %4524 = vmatprep.subr.bf16.mxu0 %v4905_v1 }
 0xb61   :  { %4526 = vmatpush3.bf16.msra.mxu0 %v5086_v35  ;;  %4272 = vmatprep.mubr.msk.f32.mxu0 %vm4906_vm0, %v4907_v2 }
 0xb62   :  { %4244 = vmatpush3.msk.msra.mxu1 %vm213_vm3, %v5167_v23  ;;  %4270 = vmatprep.subr.mxu0 %v4907_v2 }
 0xb63   :  { %4521 = vmatprep.subr.bf16.mxu1 %v4905_v1 }
 0xb65   :  { %4271 = vmatpush3.msk.msra.mxu0 %vm213_vm3, %v5097_v38 }
 0xb66   :  { %4530 = vmatprep.subr.bf16.mxu0 %v4905_v1 }
 0xc2d   :  { %v5303_v16 = vpop.f32.mrb[14].mxu0 }
 0xc2e   :  { %v4238_v17 = vpop.f32.mrb[15].mxu0 }
 0xc30   :  { %v1366_v20 = vpop.f32.mrb[12].mxu1 }
 0xc31   :  { %v1367_v18 = vadd.f32 %v1366_v20, %v5261_v41  ;;  %v4229_v21 = vpop.f32.mrb[13].mxu1 }
 0xc33   :  { %v1370_v24 = vadd.f32 %v5139_v48, %v1367_v18  ;;  %v1636_v25 = vpop.f32.mrb[16].mxu0 }
 0xc34   :  { %v1641_v26 = vrot.slane %v1636_v25, 2  ;;  %v4256_v27 = vpop.f32.mrb[17].mxu0 }
 0xc35   :  { %4662 = vtanh.f32 %v1370_v24  ;;  %v3872_v32 = vmul.f32 -1.442695, %v1370_v24 }
 0xc36   :  { %v1643_v28 = vadd.f32 %v1641_v26, %v5075_v14 }
 0xc38   :  { %4664 = vtanh.f32 %v1643_v28  ;;  %v3880_v33 = vmul.f32 -1.442695, %v1643_v28 }
 0xc39   :  { %4666 = vpow2.f32 %v3872_v32 }
 0xc3a   :  { %4668 = vpow2.f32 %v3880_v33 }
 0xc3f   :  { %v4663_v29 = vpop.eup %4662 }
 0xc40   :  { %1380 = vrot.lane.b32.xlu0 %v4663_v29, %s4908_s25 }
 0xc42   :  { %v4665_v31 = vpop.eup %4664 }
 0xc43   :  { %1656 = vrot.lane.b32.xlu1 %v4665_v31, %s4908_s25  ;;  %v4667_v39 = vpop.eup %4666 }
 0xc44   :  { %v4669_v41 = vpop.eup %4668  ;;  %v1374_v42 = vadd.f32 1.0, %v4667_v39 }
 0xc45   :  { %v1647_v43 = vadd.f32 1.0, %v4669_v41 }
 0xc46   :  { %4670 = vrcp.f32 %v1374_v42 }
 0xc47   :  { %4672 = vrcp.f32 %v1647_v43 }
 0xc50   :  { %v4671_v44 = vpop.eup %4670 }
 0xc51   :  { %v4673_v47 = vpop.eup %4672  ;;  %v1378_v51 = vmul.f32 %v4671_v44, %v5219_v10 }
 0xc52   :  { %v1654_v45 = vmul.f32 %v4673_v47, %v1652_v52 }
 0xcb2   :  { %v1381_v46 = vpop.permute.xlu0 %1380 }
 0xcb3   :  { %v1383_v14 = vmul.f32 %v4671_v44, %v1381_v46 }
 0xcb5   :  { %v1657_v49 = vpop.permute.xlu1 %1656  ;;  %1385 = vrot.lane.b32.xlu0 %v1383_v14, %s4909_s3 }
 0xcb6   :  { %v1659_v50 = vmul.f32 %v4673_v47, %v1657_v49 }
 0xcb8   :  { %1661 = vrot.lane.b32.xlu1 %v1659_v50, %s4909_s3 }
 0xd27   :  { %v1386_v53 = vpop.permute.xlu0 %1385 }
 0xd28   :  { %v5314_v54 = vadd.f32 %v1386_v53, %v1378_v51 }
 0xd2a   :  { %4674 = vtanh.f32 %v5314_v54  ;;  %v1662_v55 = vpop.permute.xlu1 %1661 }
 0xd2b   :  { %v5317_v56 = vadd.f32 %v1662_v55, %v1654_v45 }
 0xd2d   :  { %4676 = vtanh.f32 %v5317_v56 }
 0xd34   :  { %v4675_v57 = vpop.eup %4674 }
 0xd35   :  { %1391 = vrot.lane.b32.xlu0 %v4675_v57, %s4909_s3 }
 0xd37   :  { %v4677_v58 = vpop.eup %4676 }
 0xd38   :  { %1667 = vrot.lane.b32.xlu1 %v4677_v58, %s4909_s3 }
 0xda7   :  { %v1392_v10 = vpop.permute.xlu0 %1391 }
 0xda8   :  { %v1394_v59 = vmul.f32 %v4671_v44, %v1392_v10 }
 0xdaa   :  { %v1668_v60 = vpop.permute.xlu1 %1667  ;;  %1471 = vrot.lane.b32.xlu0 %v1394_v59, %s4910_s26 }
 0xdab   :  { %v1670_v61 = vmul.f32 %v4673_v47, %v1668_v60 }
 0xdad   :  { %v1742_v63 = vrot.slane %v1670_v61, 6 }
 0xdaf   :  { %1743 = vrot.lane.b32.xlu1 %v1742_v63, %s4910_s26 }
 0xe1c   :  { %v1472_v0 = vpop.permute.xlu0 %1471 }
 0xe1d   :  { %4246 = vmatmul.mubr.msk.f32.vlgmr.msra.gmra.mrb[14].mxu1 %vm209_vm4, %v1472_v0 }
 0xe1e   :  { %4523 = vmatpush3.bf16.msra.mxu1 %v5083_v30  ;;  %4263 = vmatprep.mubr.msk.f32.mxu1 %vm4906_vm0, %v4907_v2 }
 0xe1f   :  { %4261 = vmatprep.subr.mxu1 %v4907_v2 }
 0xe21   :  { %v5329_v3 = vpop.permute.xlu1 %1743 }
 0xe22   :  { %4262 = vmatpush3.msk.msra.mxu1 %vm213_vm3, %v5089_v36  ;;  %4273 = vmatmul.mubr.msk.f32.vlgmr.msra.gmra.mrb[18].mxu0 %vm209_vm4, %v5329_v3 }
 0xe23   :  { %4264 = vmatmul.mubr.msk.f32.vlgmr.msra.gmra.mrb[16].mxu1 %vm209_vm4, %v1472_v0  ;;  %4527 = vmatprep.subr.bf16.mxu1 %v4905_v1 }
 0xe24   :  { %4529 = vmatpush3.bf16.msra.mxu1 %v5091_v37  ;;  %4281 = vmatprep.mubr.msk.f32.mxu1 %vm4906_vm0, %v4907_v2 }
 0xe25   :  { %4279 = vmatprep.subr.mxu1 %v4907_v2  ;;  %4532 = vmatpush3.bf16.msra.mxu0 %v5160_v22 }
 0xe26   :  { %4288 = vmatprep.subr.mxu0 %v4907_v2  ;;  %4290 = vmatprep.mubr.msk.f32.mxu0 %vm4906_vm0, %v4907_v2 }
 0xe28   :  { %4280 = vmatpush3.msk.msra.mxu1 %vm213_vm3, %v5105_v40 }
 0xe29   :  { %4533 = vmatprep.subr.bf16.mxu1 %v4905_v1  ;;  %4289 = vmatpush3.msk.msra.mxu0 %vm213_vm3, %v5167_v23 }
 0xe2a   :  { %4536 = vmatprep.subr.bf16.mxu0 %v4905_v1 }
 0xef0   :  { %v1541_v4 = vpop.f32.mrb[14].mxu1 }
 0xef1   :  { %v1542_v19 = vadd.f32 %v1541_v4, %v5303_v16  ;;  %v4247_v6 = vpop.f32.mrb[15].mxu1 }
 0xef3   :  { %v1545_v5 = vadd.f32 %v5206_v34, %v1542_v19 }
 0xef5   :  { %4678 = vtanh.f32 %v1545_v5  ;;  %v1813_v7 = vpop.f32.mrb[18].mxu0  ;;  %v3877_v24 = vmul.f32 -1.442695, %v1545_v5 }
 0xef6   :  { %v1737_v11 = vpop.f32.mrb[16].mxu1  ;;  %v4274_v13 = vpop.f32.mrb[19].mxu0 }
 0xef7   :  { %v1814_v15 = vadd.f32 %v1813_v7, %v1737_v11  ;;  %v4265_v17 = vpop.f32.mrb[17].mxu1 }
 0xef9   :  { %v1817_v20 = vadd.f32 %v5139_v48, %v1814_v15 }
 0xefb   :  { %4680 = vtanh.f32 %v1817_v20  ;;  %v3885_v16 = vmul.f32 -1.442695, %v1817_v20 }
 0xefc   :  { %4682 = vpow2.f32 %v3877_v24  ;;  %v2096_v24 = vrot.slane %v5317_v56, 6 }
 0xefd   :  { %4684 = vpow2.f32 %v3885_v16 }
 0xeff   :  { %v4679_v18 = vpop.eup %4678 }
 0xf00   :  { %1555 = vrot.lane.b32.xlu0 %v4679_v18, %s4908_s25 }
 0xf05   :  { %v4681_v21 = vpop.eup %4680 }
 0xf06   :  { %1827 = vrot.lane.b32.xlu1 %v4681_v21, %s4908_s25  ;;  %v4683_v25 = vpop.eup %4682 }
 0xf07   :  { %v1549_v26 = vadd.f32 1.0, %v4683_v25  ;;  %v4685_v27 = vpop.eup %4684 }
 0xf08   :  { %v1821_v28 = vadd.f32 1.0, %v4685_v27 }
 0xf09   :  { %4686 = vrcp.f32 %v1549_v26 }
 0xf0a   :  { %4688 = vrcp.f32 %v1821_v28 }
 0xf13   :  { %v4687_v29 = vpop.eup %4686 }
 0xf14   :  { %v4689_v33 = vpop.eup %4688  ;;  %v1553_v42 = vmul.f32 %v4687_v29, %v5269_v62 }
 0xf15   :  { %v1825_v46 = vmul.f32 %v4689_v33, %v5314_v54 }
 0xf72   :  { %v1556_v31 = vpop.permute.xlu0 %1555 }
 0xf73   :  { %v1558_v32 = vmul.f32 %v4687_v29, %v1556_v31 }
 0xf75   :  { %1560 = vrot.lane.b32.xlu0 %v1558_v32, %s4909_s3 }
 0xf78   :  { %v1828_v39 = vpop.permute.xlu1 %1827 }
 0xf79   :  { %v1830_v41 = vmul.f32 %v4689_v33, %v1828_v39 }
 0xf7b   :  { %1832 = vrot.lane.b32.xlu1 %v1830_v41, %s4909_s3 }
 0xfe7   :  { %v1561_v43 = vpop.permute.xlu0 %1560 }
 0xfe8   :  { %v5359_v44 = vadd.f32 %v1561_v43, %v1553_v42 }
 0xfea   :  { %4690 = vtanh.f32 %v5359_v44 }
 0xfed   :  { %v1833_v14 = vpop.permute.xlu1 %1832 }
 0xfee   :  { %v5363_v47 = vadd.f32 %v1833_v14, %v1825_v46 }
 0xff0   :  { %4692 = vtanh.f32 %v5363_v47 }
 0xff4   :  { %v4691_v49 = vpop.eup %4690 }
 0xff5   :  { %1566 = vrot.lane.b32.xlu0 %v4691_v49, %s4909_s3 }
 0xffa   :  { %v4693_v50 = vpop.eup %4692 }
 0xffb   :  { %1838 = vrot.lane.b32.xlu1 %v4693_v50, %s4909_s3 }
0x1067   :  { %v1567_v51 = vpop.permute.xlu0 %1566 }
0x1068   :  { %v1569_v62 = vmul.f32 %v4687_v29, %v1567_v51 }
0x106a   :  { %1843 = vrot.lane.b32.xlu0 %v1569_v62, %s4910_s26 }
0x106d   :  { %v1839_v52 = vpop.permute.xlu1 %1838 }
0x106e   :  { %v1841_v53 = vmul.f32 %v4689_v33, %v1839_v52 }
0x1070   :  { %1918 = vrot.lane.b32.xlu1 %v1841_v53, %s4910_s26 }
0x10dc   :  { %v1844_v54 = vpop.permute.xlu0 %1843 }
0x10dd   :  { %4282 = vmatmul.mubr.msk.f32.vlgmr.msra.gmra.mrb[18].mxu1 %vm209_vm4, %v1844_v54 }
0x10de   :  { %4535 = vmatpush3.bf16.msra.mxu1 %v5052_v8  ;;  %4299 = vmatprep.mubr.msk.f32.mxu1 %vm4906_vm0, %v4907_v2 }
0x10df   :  { %4297 = vmatprep.subr.mxu1 %v4907_v2 }
0x10e2   :  { %4298 = vmatpush3.msk.msra.mxu1 %vm213_vm3, %v5062_v9  ;;  %v1919_v45 = vpop.permute.xlu1 %1918 }
0x10e3   :  { %4291 = vmatmul.mubr.msk.f32.vlgmr.msra.gmra.mrb[20].mxu0 %vm209_vm4, %v1919_v45  ;;  %4300 = vmatmul.mubr.msk.f32.vlgmr.msra.gmra.mrb[20].mxu1 %vm209_vm4, %v5329_v3 }
0x10e4   :  { %4538 = vmatpush3.bf16.msra.mxu0 %v5083_v30  ;;  %4308 = vmatprep.mubr.msk.f32.mxu0 %vm4906_vm0, %v4907_v2 }
0x10e5   :  { %4306 = vmatprep.subr.mxu0 %v4907_v2  ;;  %4539 = vmatprep.subr.bf16.mxu1 %v4905_v1 }
0x10e6   :  { %4541 = vmatpush3.bf16.msra.mxu1 %v5086_v35  ;;  %4317 = vmatprep.mubr.msk.f32.mxu1 %vm4906_vm0, %v4907_v2 }
0x10e7   :  { %4315 = vmatprep.subr.mxu1 %v4907_v2 }
0x10e8   :  { %4307 = vmatpush3.msk.msra.mxu0 %vm213_vm3, %v5089_v36 }
0x10e9   :  { %4309 = vmatmul.mubr.msk.f32.vlgmr.msra.gmra.mrb[22].mxu0 %vm209_vm4, %v1919_v45  ;;  %4542 = vmatprep.subr.bf16.mxu0 %v4905_v1 }
0x10ea   :  { %4544 = vmatpush3.bf16.msra.mxu0 %v5091_v37  ;;  %4316 = vmatpush3.msk.msra.mxu1 %vm213_vm3, %v5097_v38 }
0x10eb   :  { %4324 = vmatprep.subr.mxu0 %v4907_v2  ;;  %4326 = vmatprep.mubr.msk.f32.mxu0 %vm4906_vm0, %v4907_v2 }
0x10ec   :  { %4545 = vmatprep.subr.bf16.mxu1 %v4905_v1 }
0x10ee   :  { %4325 = vmatpush3.msk.msra.mxu0 %vm213_vm3, %v5105_v40 }
0x10ef   :  { %4548 = vmatprep.subr.bf16.mxu0 %v4905_v1 }
0x11b0   :  { %v1913_v9 = vpop.f32.mrb[18].mxu1 }
0x11b1   :  { %v4283_v36 = vpop.f32.mrb[19].mxu1 }
0x11b6   :  { %v1988_v55 = vpop.f32.mrb[20].mxu0  ;;  %v2083_v57 = vpop.f32.mrb[20].mxu1 }
0x11b7   :  { %v1989_v58 = vadd.f32 %v1988_v55, %v1913_v9  ;;  %v2087_v10 = vadd.f32 %v2083_v57, %v5073_v12  ;;  %v4292_v59 = vpop.f32.mrb[21].mxu0  ;;  %v4301_v60 = vpop.f32.mrb[21].mxu1 }
0x11b9   :  { %v1992_v61 = vadd.f32 %v5206_v34, %v1989_v58  ;;  %4694 = vtanh.f32 %v2087_v10  ;;  %v3893_v4 = vmul.f32 -1.442695, %v2087_v10 }
0x11bb   :  { %4696 = vtanh.f32 %v1992_v61  ;;  %v3890_v19 = vmul.f32 -1.442695, %v1992_v61 }
0x11bc   :  { %v5405_v63 = vpop.f32.mrb[22].mxu0  ;;  %4698 = vpow2.f32 %v3893_v4 }
0x11bd   :  { %v4310_v0 = vpop.f32.mrb[23].mxu0  ;;  %4700 = vpow2.f32 %v3890_v19 }
0x11c3   :  { %v4695_v3 = vpop.eup %4694 }
0x11c4   :  { %2100 = vrot.lane.b32.xlu1 %v4695_v3, %s4908_s25 }
0x11c5   :  { %v4697_v40 = vpop.eup %4696 }
0x11c6   :  { %2002 = vrot.lane.b32.xlu0 %v4697_v40, %s4908_s25  ;;  %v4699_v6 = vpop.eup %4698 }
0x11c7   :  { %v4701_v5 = vpop.eup %4700  ;;  %v2091_v7 = vadd.f32 1.0, %v4699_v6 }
0x11c8   :  { %v1996_v11 = vadd.f32 1.0, %v4701_v5 }
0x11c9   :  { %4702 = vrcp.f32 %v2091_v7 }
0x11ca   :  { %4704 = vrcp.f32 %v1996_v11 }
0x11d3   :  { %v4703_v13 = vpop.eup %4702 }
0x11d4   :  { %v4705_v20 = vpop.eup %4704  ;;  %v2098_v16 = vmul.f32 %v4703_v13, %v2096_v24 }
0x11d5   :  { %v2000_v27 = vmul.f32 %v4705_v20, %v5359_v44  ;;  %v5439_v44 = vld [vmem:[%s5685_s2 + $0x10] sm:$0xf] }
0x1236   :  { %v2101_v15 = vpop.permute.xlu1 %2100 }
0x1237   :  { %v2103_v17 = vmul.f32 %v4703_v13, %v2101_v15 }
0x1238   :  { %v2003_v18 = vpop.permute.xlu0 %2002 }
0x1239   :  { %v2005_v21 = vmul.f32 %v4705_v20, %v2003_v18  ;;  %2105 = vrot.lane.b32.xlu1 %v2103_v17, %s4909_s3 }
0x123b   :  { %2007 = vrot.lane.b32.xlu0 %v2005_v21, %s4909_s3 }
0x12ab   :  { %v2106_v25 = vpop.permute.xlu1 %2105 }
0x12ac   :  { %v5412_v26 = vadd.f32 %v2106_v25, %v2098_v16  ;;  %v5478_v16 = vld [vmem:[#allocation7 + $0x10] sm:$0xf] }
0x12ad   :  { %v2008_v28 = vpop.permute.xlu0 %2007 }
0x12ae   :  { %4706 = vtanh.f32 %v5412_v26  ;;  %v5416_v29 = vadd.f32 %v2008_v28, %v2000_v27  ;;  %v2542_v6 = vrot.slane %v5412_v26, 6  ;;  %v5492_v26 = vld [vmem:[#allocation8 + $0x10] sm:$0xf] }
0x12b0   :  { %4708 = vtanh.f32 %v5416_v29 }
0x12b8   :  { %v4707_v31 = vpop.eup %4706 }
0x12b9   :  { %2111 = vrot.lane.b32.xlu1 %v4707_v31, %s4909_s3 }
0x12ba   :  { %v4709_v32 = vpop.eup %4708 }
0x12bb   :  { %2013 = vrot.lane.b32.xlu0 %v4709_v32, %s4909_s3 }
0x132b   :  { %v2112_v56 = vpop.permute.xlu1 %2111 }
0x132c   :  { %v2114_v33 = vmul.f32 %v4703_v13, %v2112_v56 }
0x132d   :  { %v2014_v39 = vpop.permute.xlu0 %2013 }
0x132e   :  { %v2016_v41 = vmul.f32 %v4705_v20, %v2014_v39  ;;  %2186 = vrot.lane.b32.xlu1 %v2114_v33, %s4910_s26 }
0x1330   :  { %2286 = vrot.lane.b32.xlu0 %v2016_v41, %s4910_s26 }
0x13a0   :  { %v2187_v42 = vpop.permute.xlu1 %2186 }
0x13a1   :  { %4318 = vmatmul.mubr.msk.f32.vlgmr.msra.gmra.mrb[22].mxu1 %vm209_vm4, %v2187_v42 }
0x13a2   :  { %v2287_v43 = vpop.permute.xlu0 %2286  ;;  %4547 = vmatpush3.bf16.msra.mxu1 %v5160_v22  ;;  %4335 = vmatprep.mubr.msk.f32.mxu1 %vm4906_vm0, %v4907_v2 }
0x13a3   :  { %4327 = vmatmul.mubr.msk.f32.vlgmr.msra.gmra.mrb[24].mxu0 %vm209_vm4, %v2287_v43  ;;  %4333 = vmatprep.subr.mxu1 %v4907_v2  ;;  %v5509_v43 = vld [vmem:[%s5689_s6] ss:$0 sm:$0xff] }
0x13a4   :  { %4550 = vmatpush3.bf16.msra.mxu0 %v5052_v8  ;;  %4344 = vmatprep.mubr.msk.f32.mxu0 %vm4906_vm0, %v4907_v2 }
0x13a5   :  { %4342 = vmatprep.subr.mxu0 %v4907_v2 }
0x13a6   :  { %4334 = vmatpush3.msk.msra.mxu1 %vm213_vm3, %v5167_v23 }
0x13a7   :  { %4551 = vmatprep.subr.bf16.mxu1 %v4905_v1 }
0x13a8   :  { %4343 = vmatpush3.msk.msra.mxu0 %vm213_vm3, %v5439_v44 }
0x13a9   :  { %4345 = vmatmul.mubr.msk.f32.vlgmr.msra.gmra.mrb[26].mxu0 %vm209_vm4, %v2187_v42  ;;  %4554 = vmatprep.subr.bf16.mxu0 %v4905_v1 }
0x13aa   :  { %4556 = vmatpush3.bf16.msra.mxu0 %v5086_v35  ;;  %4362 = vmatprep.mubr.msk.f32.mxu0 %vm4906_vm0, %v4907_v2 }
0x13ab   :  { %4360 = vmatprep.subr.mxu0 %v4907_v2 }
0x13ae   :  { %4361 = vmatpush3.msk.msra.mxu0 %vm213_vm3, %v5097_v38 }
0x13af   :  { %4560 = vmatprep.subr.bf16.mxu0 %v4905_v1 }
0x1474   :  { %v2256_v46 = vpop.f32.mrb[22].mxu1 }
0x1475   :  { %v2257_v14 = vadd.f32 %v2256_v46, %v5405_v63  ;;  %v4319_v49 = vpop.f32.mrb[23].mxu1 }
0x1476   :  { %v5453_v50 = vpop.f32.mrb[24].mxu0 }
0x1477   :  { %v2260_v51 = vadd.f32 %v5139_v48, %v2257_v14  ;;  %v4328_v62 = vpop.f32.mrb[25].mxu0 }
0x1479   :  { %4710 = vtanh.f32 %v2260_v51  ;;  %v3898_v36 = vmul.f32 -1.442695, %v2260_v51 }
0x147c   :  { %v2526_v52 = vpop.f32.mrb[26].mxu0 }
0x147d   :  { %v2531_v53 = vrot.slane %v2526_v52, 6  ;;  %v4346_v54 = vpop.f32.mrb[27].mxu0 }
0x147f   :  { %v2533_v45 = vadd.f32 %v2531_v53, %v5073_v12 }
0x1481   :  { %4712 = vtanh.f32 %v2533_v45  ;;  %v3906_v55 = vmul.f32 -1.442695, %v2533_v45 }
0x1482   :  { %4714 = vpow2.f32 %v3898_v36 }
0x1483   :  { %v4711_v9 = vpop.eup %4710  ;;  %4716 = vpow2.f32 %v3906_v55 }
0x1484   :  { %2270 = vrot.lane.b32.xlu0 %v4711_v9, %s4908_s25 }
0x148b   :  { %v4713_v38 = vpop.eup %4712 }
0x148c   :  { %2546 = vrot.lane.b32.xlu1 %v4713_v38, %s4908_s25  ;;  %v4715_v57 = vpop.eup %4714 }
0x148d   :  { %v2264_v48 = vadd.f32 1.0, %v4715_v57  ;;  %v4717_v58 = vpop.eup %4716 }
0x148e   :  { %v2537_v10 = vadd.f32 1.0, %v4717_v58 }
0x148f   :  { %4718 = vrcp.f32 %v2264_v48 }
0x1490   :  { %4720 = vrcp.f32 %v2537_v10 }
0x1499   :  { %v4719_v59 = vpop.eup %4718 }
0x149a   :  { %v4721_v63 = vpop.eup %4720  ;;  %v2268_v40 = vmul.f32 %v4719_v59, %v5363_v47 }
0x149b   :  { %v2544_v5 = vmul.f32 %v4721_v63, %v2542_v6 }
0x14f6   :  { %v2271_v60 = vpop.permute.xlu0 %2270 }
0x14f7   :  { %v2273_v61 = vmul.f32 %v4719_v59, %v2271_v60 }
0x14f9   :  { %2275 = vrot.lane.b32.xlu0 %v2273_v61, %s4909_s3 }
0x14fe   :  { %v2547_v0 = vpop.permute.xlu1 %2546 }
0x14ff   :  { %v2549_v3 = vmul.f32 %v4721_v63, %v2547_v0 }
0x1501   :  { %2551 = vrot.lane.b32.xlu1 %v2549_v3, %s4909_s3 }
0x156b   :  { %v2276_v4 = vpop.permute.xlu0 %2275 }
0x156c   :  { %v5462_v19 = vadd.f32 %v2276_v4, %v2268_v40 }
0x156e   :  { %4722 = vtanh.f32 %v5462_v19 }
0x1573   :  { %v2552_v7 = vpop.permute.xlu1 %2551 }
0x1574   :  { %v5466_v11 = vadd.f32 %v2552_v7, %v2544_v5 }
0x1576   :  { %4724 = vtanh.f32 %v5466_v11 }
0x1578   :  { %v4723_v13 = vpop.eup %4722 }
0x1579   :  { %2281 = vrot.lane.b32.xlu0 %v4723_v13, %s4909_s3 }
0x1580   :  { %v4725_v15 = vpop.eup %4724 }
0x1581   :  { %2557 = vrot.lane.b32.xlu1 %v4725_v15, %s4909_s3 }
0x15eb   :  { %v2282_v47 = vpop.permute.xlu0 %2281 }
0x15ec   :  { %v2284_v17 = vmul.f32 %v4719_v59, %v2282_v47 }
0x15ee   :  { %2361 = vrot.lane.b32.xlu0 %v2284_v17, %s4910_s26 }
0x15f3   :  { %v2558_v20 = vpop.permute.xlu1 %2557 }
0x15f4   :  { %v2560_v18 = vmul.f32 %v4721_v63, %v2558_v20 }
0x15f6   :  { %v2632_v21 = vrot.slane %v2560_v18, 2 }
0x15f8   :  { %2633 = vrot.lane.b32.xlu1 %v2632_v21, %s4910_s26  ;;  %v5567_v21 = vld [vmem:[%s5692_s9] ss:$0 sm:$0xff] }
0x1660   :  { %v2362_v24 = vpop.permute.xlu0 %2361 }
0x1661   :  { %4336 = vmatmul.mubr.msk.f32.vlgmr.msra.gmra.mrb[24].mxu1 %vm209_vm4, %v2362_v24 }
0x1662   :  { %4553 = vmatpush3.bf16.msra.mxu1 %v5083_v30  ;;  %4353 = vmatprep.mubr.msk.f32.mxu1 %vm4906_vm0, %v4907_v2 }
0x1663   :  { %4351 = vmatprep.subr.mxu1 %v4907_v2 }
0x1666   :  { %4352 = vmatpush3.msk.msra.mxu1 %vm213_vm3, %v5478_v16 }
0x1667   :  { %4354 = vmatmul.mubr.msk.f32.vlgmr.msra.gmra.mrb[26].mxu1 %vm209_vm4, %v2362_v24  ;;  %4557 = vmatprep.subr.bf16.mxu1 %v4905_v1 }
0x1668   :  { %4559 = vmatpush3.bf16.msra.mxu1 %v5091_v37  ;;  %4371 = vmatprep.mubr.msk.f32.mxu1 %vm4906_vm0, %v4907_v2 }
0x1669   :  { %4369 = vmatprep.subr.mxu1 %v4907_v2 }
0x166a   :  { %v5488_v25 = vpop.permute.xlu1 %2633 }
0x166b   :  { %4363 = vmatmul.mubr.msk.f32.vlgmr.msra.gmra.mrb[28].mxu0 %vm209_vm4, %v5488_v25 }
0x166c   :  { %4370 = vmatpush3.msk.msra.mxu1 %vm213_vm3, %v5492_v26  ;;  %4562 = vmatpush3.bf16.msra.mxu0 %v5160_v22 }
0x166d   :  { %4563 = vmatprep.subr.bf16.mxu1 %v4905_v1  ;;  %4378 = vmatprep.subr.mxu0 %v4907_v2 }
0x166e   :  { %4380 = vmatprep.mubr.msk.f32.mxu0 %vm4906_vm0, %v4907_v2 }
0x1670   :  { %4379 = vmatpush3.msk.msra.mxu0 %vm213_vm3, %v5167_v23 }
0x1671   :  { %4566 = vmatprep.subr.bf16.mxu0 %v4905_v1 }
0x1734   :  { %v2431_v27 = vpop.f32.mrb[24].mxu1 }
0x1735   :  { %v2432_v28 = vadd.f32 %v2431_v27, %v5453_v50  ;;  %v4337_v31 = vpop.f32.mrb[25].mxu1 }
0x1737   :  { %v2435_v32 = vadd.f32 %v5206_v34, %v2432_v28 }
0x1739   :  { %4726 = vtanh.f32 %v2435_v32  ;;  %v3903_v34 = vmul.f32 -1.442695, %v2435_v32 }
0x173a   :  { %v2627_v56 = vpop.f32.mrb[26].mxu1 }
0x173b   :  { %v4355_v33 = vpop.f32.mrb[27].mxu1 }
0x173e   :  { %v2703_v39 = vpop.f32.mrb[28].mxu0 }
0x173f   :  { %v2704_v41 = vadd.f32 %v2703_v39, %v2627_v56  ;;  %v4364_v42 = vpop.f32.mrb[29].mxu0 }
0x1741   :  { %v2707_v23 = vadd.f32 %v5509_v43, %v2704_v41 }
0x1743   :  { %v4727_v46 = vpop.eup %4726  ;;  %4728 = vtanh.f32 %v2707_v23  ;;  %v3911_v49 = vmul.f32 -1.442695, %v2707_v23 }
0x1744   :  { %2445 = vrot.lane.b32.xlu0 %v4727_v46, %s4908_s25  ;;  %4730 = vpow2.f32 %v3903_v34 }
0x1745   :  { %4732 = vpow2.f32 %v3911_v49 }
0x174d   :  { %v4729_v14 = vpop.eup %4728 }
0x174e   :  { %2717 = vrot.lane.b32.xlu1 %v4729_v14, %s4908_s25  ;;  %v4731_v50 = vpop.eup %4730 }
0x174f   :  { %v2439_v51 = vadd.f32 1.0, %v4731_v50  ;;  %v4733_v62 = vpop.eup %4732 }
0x1750   :  { %v2711_v52 = vadd.f32 1.0, %v4733_v62 }
0x1751   :  { %4734 = vrcp.f32 %v2439_v51  ;;  %v2989_v51 = vrot.slane %v5466_v11, 6 }
0x1752   :  { %4736 = vrcp.f32 %v2711_v52 }
0x175b   :  { %v4735_v53 = vpop.eup %4734 }
0x175c   :  { %v4737_v9 = vpop.eup %4736  ;;  %v2443_v55 = vmul.f32 %v4735_v53, %v5416_v29 }
0x175d   :  { %v2715_v58 = vmul.f32 %v4737_v9, %v5462_v19  ;;  %v5547_v19 = vld [vmem:[#allocation5 + $0x10] sm:$0xf] }
0x17b6   :  { %v2446_v54 = vpop.permute.xlu0 %2445 }
0x17b7   :  { %v2448_v45 = vmul.f32 %v4735_v53, %v2446_v54 }
0x17b9   :  { %2450 = vrot.lane.b32.xlu0 %v2448_v45, %s4909_s3 }
0x17c0   :  { %v2718_v38 = vpop.permute.xlu1 %2717 }
0x17c1   :  { %v2720_v36 = vmul.f32 %v4737_v9, %v2718_v38 }
0x17c3   :  { %2722 = vrot.lane.b32.xlu1 %v2720_v36, %s4909_s3 }
0x182b   :  { %v2451_v57 = vpop.permute.xlu0 %2450 }
0x182c   :  { %v5517_v48 = vadd.f32 %v2451_v57, %v2443_v55 }
0x182e   :  { %4738 = vtanh.f32 %v5517_v48 }
0x1835   :  { %v2723_v10 = vpop.permute.xlu1 %2722 }
0x1836   :  { %v5521_v59 = vadd.f32 %v2723_v10, %v2715_v58 }
0x1838   :  { %v4739_v60 = vpop.eup %4738  ;;  %4740 = vtanh.f32 %v5521_v59 }
0x1839   :  { %2456 = vrot.lane.b32.xlu0 %v4739_v60, %s4909_s3 }
0x1842   :  { %v4741_v61 = vpop.eup %4740 }
0x1843   :  { %2728 = vrot.lane.b32.xlu1 %v4741_v61, %s4909_s3  ;;  %v5601_v61 = vld [vmem:[%s5690_s7 + $0x10] sm:$0xf] }
0x18ab   :  { %v2457_v63 = vpop.permute.xlu0 %2456 }
0x18ac   :  { %v2459_v29 = vmul.f32 %v4735_v53, %v2457_v63 }
0x18ae   :  { %2733 = vrot.lane.b32.xlu0 %v2459_v29, %s4910_s26 }
0x18b5   :  { %v2729_v0 = vpop.permute.xlu1 %2728 }
0x18b6   :  { %v2731_v3 = vmul.f32 %v4737_v9, %v2729_v0 }
0x18b8   :  { %2808 = vrot.lane.b32.xlu1 %v2731_v3, %s4910_s26 }
0x1920   :  { %v2734_v40 = vpop.permute.xlu0 %2733 }
0x1921   :  { %4372 = vmatmul.mubr.msk.f32.vlgmr.msra.gmra.mrb[28].mxu1 %vm209_vm4, %v2734_v40 }
0x1922   :  { %4565 = vmatpush3.bf16.msra.mxu1 %v5052_v8  ;;  %4389 = vmatprep.mubr.msk.f32.mxu1 %vm4906_vm0, %v4907_v2 }
0x1923   :  { %4387 = vmatprep.subr.mxu1 %v4907_v2 }
0x1926   :  { %4388 = vmatpush3.msk.msra.mxu1 %vm213_vm3, %v5439_v44 }
0x1927   :  { %4390 = vmatmul.mubr.msk.f32.vlgmr.msra.gmra.mrb[30].mxu1 %vm209_vm4, %v5488_v25  ;;  %4569 = vmatprep.subr.bf16.mxu1 %v4905_v1 }
0x1928   :  { %4571 = vmatpush3.bf16.msra.mxu1 %v5086_v35  ;;  %4407 = vmatprep.mubr.msk.f32.mxu1 %vm4906_vm0, %v4907_v2 }
0x1929   :  { %4405 = vmatprep.subr.mxu1 %v4907_v2 }
0x192a   :  { %v2809_v4 = vpop.permute.xlu1 %2808 }
0x192b   :  { %4381 = vmatmul.mubr.msk.f32.vlgmr.msra.gmra.mrb[30].mxu0 %vm209_vm4, %v2809_v4 }
0x192c   :  { %4568 = vmatpush3.bf16.msra.mxu0 %v5083_v30  ;;  %4398 = vmatprep.mubr.msk.f32.mxu0 %vm4906_vm0, %v4907_v2 }
0x192d   :  { %4396 = vmatprep.subr.mxu0 %v4907_v2  ;;  %4406 = vmatpush3.msk.msra.mxu1 %vm213_vm3, %v5547_v19 }
0x192e   :  { %4575 = vmatprep.subr.bf16.mxu1 %v4905_v1 }
0x1930   :  { %4397 = vmatpush3.msk.msra.mxu0 %vm213_vm3, %v5478_v16 }
0x1931   :  { %4399 = vmatmul.mubr.msk.f32.vlgmr.msra.gmra.mrb[32].mxu0 %vm209_vm4, %v2809_v4  ;;  %4572 = vmatprep.subr.bf16.mxu0 %v4905_v1 }
0x1932   :  { %4574 = vmatpush3.bf16.msra.mxu0 %v5091_v37  ;;  %4416 = vmatprep.mubr.msk.f32.mxu0 %vm4906_vm0, %v4907_v2 }
0x1933   :  { %4414 = vmatprep.subr.mxu0 %v4907_v2 }
0x1936   :  { %4415 = vmatpush3.msk.msra.mxu0 %vm213_vm3, %v5492_v26 }
0x1937   :  { %4578 = vmatprep.subr.bf16.mxu0 %v4905_v1 }
0x19f4   :  { %v2803_v6 = vpop.f32.mrb[28].mxu1 }
0x19f5   :  { %v4373_v5 = vpop.f32.mrb[29].mxu1 }
0x19fa   :  { %v2973_v7 = vpop.f32.mrb[30].mxu1 }
0x19fb   :  { %v2978_v13 = vrot.slane %v2973_v7, 4  ;;  %v4391_v15 = vpop.f32.mrb[31].mxu1 }
0x19fd   :  { %v2980_v47 = vadd.f32 %v2978_v13, %v5073_v12 }
0x19fe   :  { %v2878_v17 = vpop.f32.mrb[30].mxu0 }
0x19ff   :  { %4742 = vtanh.f32 %v2980_v47  ;;  %v2879_v20 = vadd.f32 %v2878_v17, %v2803_v6  ;;  %v4382_v18 = vpop.f32.mrb[31].mxu0  ;;  %v3919_v32 = vmul.f32 -1.442695, %v2980_v47 }
0x1a01   :  { %v2882_v24 = vadd.f32 %v5567_v21, %v2879_v20 }
0x1a03   :  { %4744 = vtanh.f32 %v2882_v24  ;;  %v3916_v56 = vmul.f32 -1.442695, %v2882_v24 }
0x1a04   :  { %v5570_v25 = vpop.f32.mrb[32].mxu0  ;;  %4746 = vpow2.f32 %v3919_v32 }
0x1a05   :  { %v4400_v27 = vpop.f32.mrb[33].mxu0  ;;  %4748 = vpow2.f32 %v3916_v56 }
0x1a09   :  { %v4743_v28 = vpop.eup %4742 }
0x1a0a   :  { %2993 = vrot.lane.b32.xlu1 %v4743_v28, %s4908_s25 }
0x1a0d   :  { %v4745_v31 = vpop.eup %4744 }
0x1a0e   :  { %2892 = vrot.lane.b32.xlu0 %v4745_v31, %s4908_s25  ;;  %v4747_v33 = vpop.eup %4746 }
0x1a0f   :  { %v2984_v39 = vadd.f32 1.0, %v4747_v33  ;;  %v4749_v41 = vpop.eup %4748 }
0x1a10   :  { %v2886_v42 = vadd.f32 1.0, %v4749_v41 }
0x1a11   :  { %4750 = vrcp.f32 %v2984_v39 }
0x1a12   :  { %4752 = vrcp.f32 %v2886_v42 }
0x1a1b   :  { %v4751_v23 = vpop.eup %4750 }
0x1a1c   :  { %v4753_v34 = vpop.eup %4752  ;;  %v2991_v62 = vmul.f32 %v4751_v23, %v2989_v51 }
0x1a1d   :  { %v2890_v54 = vmul.f32 %v4753_v34, %v5517_v48 }
0x1a7c   :  { %v2994_v46 = vpop.permute.xlu1 %2993 }
0x1a7d   :  { %v2996_v14 = vmul.f32 %v4751_v23, %v2994_v46 }
0x1a7f   :  { %2998 = vrot.lane.b32.xlu1 %v2996_v14, %s4909_s3 }
0x1a80   :  { %v2893_v49 = vpop.permute.xlu0 %2892 }
0x1a81   :  { %v2895_v50 = vmul.f32 %v4753_v34, %v2893_v49 }
0x1a83   :  { %2897 = vrot.lane.b32.xlu0 %v2895_v50, %s4909_s3 }
0x1af1   :  { %v2999_v52 = vpop.permute.xlu1 %2998 }
0x1af2   :  { %v5577_v53 = vadd.f32 %v2999_v52, %v2991_v62 }
0x1af4   :  { %4754 = vtanh.f32 %v5577_v53  ;;  %v3436_v33 = vrot.slane %v5577_v53, 6 }
0x1af5   :  { %v2898_v45 = vpop.permute.xlu0 %2897 }
0x1af6   :  { %v5581_v9 = vadd.f32 %v2898_v45, %v2890_v54 }
0x1af8   :  { %4756 = vtanh.f32 %v5581_v9 }
0x1afe   :  { %v4755_v38 = vpop.eup %4754 }
0x1aff   :  { %3004 = vrot.lane.b32.xlu1 %v4755_v38, %s4909_s3 }
0x1b02   :  { %v4757_v36 = vpop.eup %4756 }
0x1b03   :  { %2903 = vrot.lane.b32.xlu0 %v4757_v36, %s4909_s3 }
0x1b71   :  { %v3005_v11 = vpop.permute.xlu1 %3004 }
0x1b72   :  { %v3007_v55 = vmul.f32 %v4751_v23, %v3005_v11 }
0x1b74   :  { %v3079_v57 = vrot.slane %v3007_v55, 4 }
0x1b75   :  { %v2904_v58 = vpop.permute.xlu0 %2903 }
0x1b76   :  { %v2906_v10 = vmul.f32 %v4753_v34, %v2904_v58  ;;  %3080 = vrot.lane.b32.xlu1 %v3079_v57, %s4910_s26 }
0x1b78   :  { %3180 = vrot.lane.b32.xlu0 %v2906_v10, %s4910_s26 }
0x1be8   :  { %v3081_v48 = vpop.permute.xlu1 %3080 }
0x1be9   :  { %4408 = vmatmul.mubr.msk.f32.vlgmr.msra.gmra.mrb[32].mxu1 %vm209_vm4, %v3081_v48 }
0x1bea   :  { %v3181_v60 = vpop.permute.xlu0 %3180  ;;  %4577 = vmatpush3.bf16.msra.mxu1 %v5160_v22  ;;  %4425 = vmatprep.mubr.msk.f32.mxu1 %vm4906_vm0, %v4907_v2 }
0x1beb   :  { %4417 = vmatmul.mubr.msk.f32.vlgmr.msra.gmra.mrb[34].mxu0 %vm209_vm4, %v3181_v60  ;;  %4423 = vmatprep.subr.mxu1 %v4907_v2 }
0x1bec   :  { %4580 = vmatpush3.bf16.msra.mxu0 %v5052_v8  ;;  %4434 = vmatprep.mubr.msk.f32.mxu0 %vm4906_vm0, %v4907_v2 }
0x1bed   :  { %4432 = vmatprep.subr.mxu0 %v4907_v2 }
0x1bee   :  { %4424 = vmatpush3.msk.msra.mxu1 %vm213_vm3, %v5601_v61 }
0x1bef   :  { %4581 = vmatprep.subr.bf16.mxu1 %v4905_v1 }
0x1bf0   :  { %4433 = vmatpush3.msk.msra.mxu0 %vm213_vm3, %v5439_v44 }
0x1bf1   :  { %4435 = vmatmul.mubr.msk.f32.vlgmr.msra.gmra.mrb[36].mxu0 %vm209_vm4, %v3081_v48  ;;  %4584 = vmatprep.subr.bf16.mxu0 %v4905_v1 }
0x1bf2   :  { %4586 = vmatpush3.bf16.msra.mxu0 %v5086_v35  ;;  %4452 = vmatprep.mubr.msk.f32.mxu0 %vm4906_vm0, %v4907_v2 }
0x1bf3   :  { %4450 = vmatprep.subr.mxu0 %v4907_v2 }
0x1bf6   :  { %4451 = vmatpush3.msk.msra.mxu0 %vm213_vm3, %v5547_v19 }
0x1bf7   :  { %4590 = vmatprep.subr.bf16.mxu0 %v4905_v1 }
0x1cbc   :  { %v3150_v8 = vpop.f32.mrb[32].mxu1 }
0x1cbd   :  { %v3151_v63 = vadd.f32 %v3150_v8, %v5570_v25  ;;  %v4409_v44 = vpop.f32.mrb[33].mxu1 }
0x1cbe   :  { %v5618_v29 = vpop.f32.mrb[34].mxu0 }
0x1cbf   :  { %v3154_v0 = vadd.f32 %v5509_v43, %v3151_v63  ;;  %v4418_v3 = vpop.f32.mrb[35].mxu0 }
0x1cc1   :  { %4758 = vtanh.f32 %v3154_v0  ;;  %v3924_v7 = vmul.f32 -1.442695, %v3154_v0 }
0x1cc4   :  { %v3420_v35 = vpop.f32.mrb[36].mxu0 }
0x1cc5   :  { %v3425_v40 = vrot.slane %v3420_v35, 2  ;;  %v4436_v4 = vpop.f32.mrb[37].mxu0 }
0x1cc7   :  { %v3427_v6 = vadd.f32 %v3425_v40, %v5073_v12 }
0x1cc9   :  { %4760 = vtanh.f32 %v3427_v6  ;;  %v3932_v13 = vmul.f32 -1.442695, %v3427_v6 }
0x1cca   :  { %4762 = vpow2.f32 %v3924_v7 }
0x1ccb   :  { %v4759_v5 = vpop.eup %4758  ;;  %4764 = vpow2.f32 %v3932_v13 }
0x1ccc   :  { %3164 = vrot.lane.b32.xlu0 %v4759_v5, %s4908_s25 }
0x1cd3   :  { %v4761_v19 = vpop.eup %4760 }
0x1cd4   :  { %3440 = vrot.lane.b32.xlu1 %v4761_v19, %s4908_s25  ;;  %v4763_v15 = vpop.eup %4762 }
0x1cd5   :  { %v3158_v47 = vadd.f32 1.0, %v4763_v15  ;;  %v4765_v17 = vpop.eup %4764 }
0x1cd6   :  { %v3431_v20 = vadd.f32 1.0, %v4765_v17 }
0x1cd7   :  { %4766 = vrcp.f32 %v3158_v47 }
0x1cd8   :  { %4768 = vrcp.f32 %v3431_v20 }
0x1ce1   :  { %v4767_v18 = vpop.eup %4766 }
0x1ce2   :  { %v4769_v25 = vpop.eup %4768  ;;  %v3162_v31 = vmul.f32 %v4767_v18, %v5521_v59 }
0x1ce3   :  { %v3438_v39 = vmul.f32 %v4769_v25, %v3436_v33 }
0x1d3e   :  { %v3165_v24 = vpop.permute.xlu0 %3164 }
0x1d3f   :  { %v3167_v12 = vmul.f32 %v4767_v18, %v3165_v24 }
0x1d41   :  { %3169 = vrot.lane.b32.xlu0 %v3167_v12, %s4909_s3 }
0x1d46   :  { %v3441_v27 = vpop.permute.xlu1 %3440 }
0x1d47   :  { %v3443_v28 = vmul.f32 %v4769_v25, %v3441_v27 }
0x1d49   :  { %3445 = vrot.lane.b32.xlu1 %v3443_v28, %s4909_s3 }
0x1db3   :  { %v3170_v32 = vpop.permute.xlu0 %3169 }
0x1db4   :  { %v5627_v56 = vadd.f32 %v3170_v32, %v3162_v31 }
0x1db6   :  { %4770 = vtanh.f32 %v5627_v56 }
0x1dbb   :  { %v3446_v41 = vpop.permute.xlu1 %3445 }
0x1dbc   :  { %v3448_v42 = vadd.f32 %v3446_v41, %v3438_v39  ;;  %v3943_v39 = vld [vmem:[%s5693_s10] ss:$0 sm:$0xff] }
0x1dbe   :  { %4772 = vtanh.f32 %v3448_v42 }
0x1dc0   :  { %v4771_v23 = vpop.eup %4770 }
0x1dc1   :  { %3175 = vrot.lane.b32.xlu0 %v4771_v23, %s4909_s3 }
0x1dc8   :  { %v4773_v46 = vpop.eup %4772 }
0x1dc9   :  { %3451 = vrot.lane.b32.xlu1 %v4773_v46, %s4909_s3 }
0x1e33   :  { %v3176_v14 = vpop.permute.xlu0 %3175 }
0x1e34   :  { %v3178_v34 = vmul.f32 %v4767_v18, %v3176_v14 }
0x1e36   :  { %3255 = vrot.lane.b32.xlu0 %v3178_v34, %s4910_s26 }
0x1e3b   :  { %v3452_v59 = vpop.permute.xlu1 %3451 }
0x1e3c   :  { %v3454_v49 = vmul.f32 %v4769_v25, %v3452_v59 }
0x1e3e   :  { %v3526_v50 = vrot.slane %v3454_v49, 6 }
0x1e40   :  { %3527 = vrot.lane.b32.xlu1 %v3526_v50, %s4910_s26 }
0x1ea8   :  { %v3256_v51 = vpop.permute.xlu0 %3255 }
0x1ea9   :  { %4426 = vmatmul.mubr.msk.f32.vlgmr.msra.gmra.mrb[34].mxu1 %vm209_vm4, %v3256_v51 }
0x1eaa   :  { %4583 = vmatpush3.bf16.msra.mxu1 %v5083_v30  ;;  %4443 = vmatprep.mubr.msk.f32.mxu1 %vm4906_vm0, %v4907_v2 }
0x1eab   :  { %4441 = vmatprep.subr.mxu1 %v4907_v2 }
0x1eae   :  { %4442 = vmatpush3.msk.msra.mxu1 %vm213_vm3, %v5478_v16 }
0x1eaf   :  { %4444 = vmatmul.mubr.msk.f32.vlgmr.msra.gmra.mrb[36].mxu1 %vm209_vm4, %v3256_v51  ;;  %4587 = vmatprep.subr.bf16.mxu1 %v4905_v1  ;;  %v3944_v51 = vld [vmem:[#allocation2] ss:$0 sm:$0xff] }
0x1eb0   :  { %4589 = vmatpush3.bf16.msra.mxu1 %v5091_v37  ;;  %4461 = vmatprep.mubr.msk.f32.mxu1 %vm4906_vm0, %v4907_v2 }
0x1eb1   :  { %4459 = vmatprep.subr.mxu1 %v4907_v2 }
0x1eb2   :  { %v3528_v30 = vpop.permute.xlu1 %3527 }
0x1eb3   :  { %4453 = vmatmul.mubr.msk.f32.vlgmr.msra.gmra.mrb[38].mxu0 %vm209_vm4, %v3528_v30 }
0x1eb4   :  { %4460 = vmatpush3.msk.msra.mxu1 %vm213_vm3, %v5492_v26  ;;  %4592 = vmatpush3.bf16.msra.mxu0 %v5160_v22 }
0x1eb5   :  { %4468 = vmatprep.subr.mxu0 %v4907_v2  ;;  %4470 = vmatprep.mubr.msk.f32.mxu0 %vm4906_vm0, %v4907_v2 }
0x1eb8   :  { %4469 = vmatpush3.msk.msra.mxu0 %vm213_vm3, %v5601_v61 }
0x1f7c   :  { %v3325_v1 = vpop.f32.mrb[34].mxu1 }
0x1f7d   :  { %v3326_v37 = vadd.f32 %v3325_v1, %v5618_v29  ;;  %v4427_v16 = vpop.f32.mrb[35].mxu1 }
0x1f7f   :  { %v3329_v62 = vadd.f32 %v5567_v21, %v3326_v37 }
0x1f81   :  { %4774 = vtanh.f32 %v3329_v62  ;;  %v3929_v36 = vmul.f32 -1.442695, %v3329_v62 }
0x1f82   :  { %v3521_v52 = vpop.f32.mrb[36].mxu1 }
0x1f83   :  { %v4445_v53 = vpop.f32.mrb[37].mxu1 }
0x1f86   :  { %v3597_v26 = vpop.f32.mrb[38].mxu0 }
0x1f87   :  { %v3598_v54 = vadd.f32 %v3597_v26, %v3521_v52  ;;  %v4454_v22 = vpop.f32.mrb[39].mxu0 }
0x1f89   :  { %v3601_v45 = vadd.f32 %v5509_v43, %v3598_v54 }
0x1f8b   :  { %v4775_v38 = vpop.eup %4774  ;;  %4776 = vtanh.f32 %v3601_v45  ;;  %v3937_v11 = vmul.f32 -1.442695, %v3601_v45 }
0x1f8c   :  { %3339 = vrot.lane.b32.xlu0 %v4775_v38, %s4908_s25  ;;  %4778 = vpow2.f32 %v3929_v36 }
0x1f8d   :  { %4780 = vpow2.f32 %v3937_v11 }
0x1f95   :  { %v4777_v2 = vpop.eup %4776 }
0x1f96   :  { %3611 = vrot.lane.b32.xlu1 %v4777_v2, %s4908_s25  ;;  %v4779_v55 = vpop.eup %4778 }
0x1f97   :  { %v3333_v57 = vadd.f32 1.0, %v4779_v55  ;;  %v4781_v58 = vpop.eup %4780 }
0x1f98   :  { %v3605_v10 = vadd.f32 1.0, %v4781_v58 }
0x1f99   :  { %4782 = vrcp.f32 %v3333_v57 }
0x1f9a   :  { %4784 = vrcp.f32 %v3605_v10 }
0x1fa3   :  { %v4783_v48 = vpop.eup %4782 }
0x1fa4   :  { %v4785_v61 = vpop.eup %4784  ;;  %v3337_v44 = vmul.f32 %v4783_v48, %v5581_v9 }
0x1fa5   :  { %v3609_v3 = vmul.f32 %v4785_v61, %v5627_v56 }
0x1ffe   :  { %v3340_v60 = vpop.permute.xlu0 %3339 }
0x1fff   :  { %v3342_v43 = vmul.f32 %v4783_v48, %v3340_v60 }
0x2001   :  { %3344 = vrot.lane.b32.xlu0 %v3342_v43, %s4909_s3 }
0x2008   :  { %v3612_v8 = vpop.permute.xlu1 %3611 }
0x2009   :  { %v3614_v63 = vmul.f32 %v4785_v61, %v3612_v8 }
0x200b   :  { %3616 = vrot.lane.b32.xlu1 %v3614_v63, %s4909_s3 }
0x2073   :  { %v3345_v29 = vpop.permute.xlu0 %3344 }
0x2074   :  { %v3347_v0 = vadd.f32 %v3345_v29, %v3337_v44 }
0x2076   :  { %4786 = vtanh.f32 %v3347_v0 }
0x207d   :  { %v3617_v35 = vpop.permute.xlu1 %3616 }
0x207e   :  { %v3619_v40 = vadd.f32 %v3617_v35, %v3609_v3 }
0x2080   :  { %v4787_v4 = vpop.eup %4786  ;;  %4788 = vtanh.f32 %v3619_v40 }
0x2081   :  { %3350 = vrot.lane.b32.xlu0 %v4787_v4, %s4909_s3 }
0x208a   :  { %v4789_v6 = vpop.eup %4788 }
0x208b   :  { %3622 = vrot.lane.b32.xlu1 %v4789_v6, %s4909_s3 }
0x20f3   :  { %v3351_v5 = vpop.permute.xlu0 %3350 }
0x20f4   :  { %v3353_v19 = vmul.f32 %v4783_v48, %v3351_v5 }
0x20f6   :  { %3627 = vrot.lane.b32.xlu0 %v3353_v19, %s4910_s26 }
0x20fd   :  { %v3623_v7 = vpop.permute.xlu1 %3622 }
0x20fe   :  { %v3625_v9 = vmul.f32 %v4785_v61, %v3623_v7 }
0x2100   :  { %3702 = vrot.lane.b32.xlu1 %v3625_v9, %s4910_s26 }
0x2168   :  { %v3628_v13 = vpop.permute.xlu0 %3627 }
0x2169   :  { %4462 = vmatmul.mubr.msk.f32.vlgmr.msra.gmra.mrb[38].mxu1 %vm209_vm4, %v3628_v13 }
0x2172   :  { %v3703_v15 = vpop.permute.xlu1 %3702 }
0x2173   :  { %4471 = vmatmul.mubr.msk.f32.vlgmr.msra.gmra.mrb[40].mxu0 %vm209_vm4, %v3703_v15 }
0x223c   :  { %v3697_v47 = vpop.f32.mrb[38].mxu1 }
0x223d   :  { %v4463_v17 = vpop.f32.mrb[39].mxu1 }
0x2246   :  { %v3772_v20 = vpop.f32.mrb[40].mxu0 }
0x2247   :  { %v3773_v18 = vadd.f32 %v3772_v20, %v3697_v47  ;;  %v4472_v24 = vpop.f32.mrb[41].mxu0 }
0x2249   :  { %v3776_v12 = vadd.f32 %v5567_v21, %v3773_v18 }
0x224b   :  { %4790 = vtanh.f32 %v3776_v12  ;;  %v3942_v27 = vmul.f32 -1.442695, %v3776_v12 }
0x224d   :  { %4792 = vpow2.f32 %v3942_v27 }
0x2255   :  { %v4791_v25 = vpop.eup %4790 }
0x2256   :  { %3786 = vrot.lane.b32.xlu0 %v4791_v25, %s4908_s25 }
0x2257   :  { %v4793_v28 = vpop.eup %4792 }
0x2258   :  { %v3780_v31 = vadd.f32 1.0, %v4793_v28 }
0x225a   :  { %4794 = vrcp.f32 %v3780_v31 }
0x2264   :  { %v4795_v32 = vpop.eup %4794 }
0x2265   :  { %v3784_v21 = vmul.f32 %v4795_v32, %v3347_v0 }
0x22c8   :  { %v3787_v56 = vpop.permute.xlu0 %3786 }
0x22c9   :  { %v3789_v33 = vmul.f32 %v4795_v32, %v3787_v56 }
0x22cb   :  { %3791 = vrot.lane.b32.xlu1 %v3789_v33, %s4909_s3 }
0x22cf   :  { %3807 = vrot.lane.b32.xlu1 %v3943_v39, %s4911_s20 }
0x233d   :  { %v3792_v41 = vpop.permute.xlu1 %3791 }
0x233e   :  { %v3794_v42 = vadd.f32 %v3792_v41, %v3784_v21 }
0x2340   :  { %4796 = vtanh.f32 %v3794_v42 }
0x2341   :  { %v3808_v14 = vpop.permute.xlu1 %3807 }
0x234a   :  { %v4797_v23 = vpop.eup %4796 }
0x234b   :  { %3797 = vrot.lane.b32.xlu0 %v4797_v23, %s4909_s3 }
0x23bd   :  { %v3798_v46 = vpop.permute.xlu0 %3797 }
0x23be   :  { %v3800_v34 = vmul.f32 %v4795_v32, %v3798_v46 }
0x23c0   :  { %v3810_v59 = vmul.f32 %v3808_v14, %v3800_v34 }
0x23c2   :  { %3812 = vrot.lane.b32.xlu0 %v3810_v59, %s4910_s26 }
0x2434   :  { %v3813_v49 = vpop.permute.xlu0 %3812 }
0x2435   :  { %v3816_v50 = vsel %vm3815_vm5, %v3813_v49, 0.0 }
0x2436   :  { %3817 = vadd.xlane.f32.xlu1 %v3816_v50 }
0x24c3   :  { %v3818_v30 = vpop.xlane.xlu1 %3817 }
0x24c4   :  { %v3826_v1 = vadd.f32 %v3944_v51, %v3818_v30 }
0x24c6   :  { %3828 = vst.msk [vmem:[%s5695_s12] sm:$0x3] %vm3827_vm6, %v3826_v1 }
0x24c7   :  { %3833 = vsyncpa [#allocation4], 1 }
0x24c8   :  { %3834 = vsyncpa [#allocation6], 1 }
0x24c9   :  { %3835 = vsyncpa [#allocation9], 1 }

</bundles_post_ra>
